<compile_context>
chip_gen: v7x
topology: tpu7x:2x2x1
jax: 0.10.0
libtpu: 0.0.40
codegen_flags: <defaults>
</compile_context>

<pallas_src>
import jax
import jax.numpy as jnp
from jax.experimental import pallas as pl
from jax.experimental.pallas import tpu as pltpu

EMBED_DIM = 512        # SE_block / head input_dim in POSTER
NUM_CLASSES = 7        # config['num_classes'] (typical FER setting)
HEAD_PAD = 128         # lane-dense padded head width


def _round_up(x, m):
    return (x + m - 1) // m * m


def poster_tail_kernel(y_ref, w1_ref, b1_ref, w2_ref, b2_ref, wh_ref, bh_ref,
                       out_ref, feat_ref):
    """Fused SE_block + ClassificationHead for one (tm, D) batch tile.

    y_ref   : (tm, D)    f32  features from pyramid_fuse
    w1_ref  : (D, D)     bf16 SE linear1 weight (pre-transposed, x @ W)
    b1_ref  : (1, D)     f32
    w2_ref  : (D, D)     bf16 SE linear2 weight
    b2_ref  : (1, D)     f32
    wh_ref  : (D, 128)   bf16 head weight, zero-padded from C=7 to 128 lanes
    bh_ref  : (1, 128)   f32  head bias, zero-padded
    out_ref : (tm, 128)  f32  padded logits
    feat_ref: (tm, D)    f32  SE-gated features (y_feat)
    """
    y = y_ref[...]                                  # f32, reused for the gate
    y_bf = y.astype(jnp.bfloat16)                   # single cast for the MXU

    # SE_block: g = sigmoid(linear2(relu(linear1(y)))) ; y_feat = y * g
    h = jnp.dot(y_bf, w1_ref[...],
                preferred_element_type=jnp.float32) + b1_ref[...]
    h = jnp.maximum(h, 0.0)                         # ReLU (VPU, f32)
    g = jnp.dot(h.astype(jnp.bfloat16), w2_ref[...],
                preferred_element_type=jnp.float32) + b2_ref[...]
    g = jax.nn.sigmoid(g)                           # EUP, f32
    y_feat = y * g
    feat_ref[...] = y_feat

    # ClassificationHead: flatten (already 2-D) + linear, lane-dense 128 out
    logits = jnp.dot(y_feat.astype(jnp.bfloat16), wh_ref[...],
                     preferred_element_type=jnp.float32) + bh_ref[...]
    out_ref[...] = logits


def poster_tail(y, params, *, tm=256):
    """y: (B, EMBED_DIM) float32 features. Returns (logits (B, C), y_feat (B, D))."""
    B, D = y.shape
    C = int(params["num_classes"])
    Cp = params["wh"].shape[1]

    # Pad batch to at least 8 sublanes; single tile for small B, tm-row tiles
    # (multiple of 8, lane-dense D=512) for large B.
    if B <= tm:
        Bp = _round_up(max(B, 1), 8)
        tm_eff = Bp
    else:
        Bp = _round_up(B, tm)
        tm_eff = tm
    if Bp != B:
        y = jnp.pad(y, ((0, Bp - B), (0, 0)))

    grid = (Bp // tm_eff,)
    act = lambda i: (i, 0)     # batch-tiled activations / outputs
    rep = lambda i: (0, 0)     # weights & biases resident across the batch grid

    flops = 2 * Bp * (2 * D * D + D * Cp)
    bytes_accessed = (
        Bp * D * 4 * 2                      # y in, y_feat out
        + Bp * Cp * 4                       # logits out
        + (2 * D * D + D * Cp) * 2          # bf16 weights
        + (2 * D + Cp) * 4                  # biases
    )
    cost = pl.CostEstimate(flops=flops, transcendentals=Bp * D,
                           bytes_accessed=bytes_accessed)

    out_p, feat_p = pl.pallas_call(
        poster_tail_kernel,
        out_shape=(
            jax.ShapeDtypeStruct((Bp, Cp), jnp.float32),
            jax.ShapeDtypeStruct((Bp, D), jnp.float32),
        ),
        grid=grid,
        in_specs=[
            pl.BlockSpec((tm_eff, D), act),   # y
            pl.BlockSpec((D, D), rep),        # w1 (bf16)
            pl.BlockSpec((1, D), rep),        # b1
            pl.BlockSpec((D, D), rep),        # w2 (bf16)
            pl.BlockSpec((1, D), rep),        # b2
            pl.BlockSpec((D, Cp), rep),       # wh (bf16, padded)
            pl.BlockSpec((1, Cp), rep),       # bh (padded)
        ],
        out_specs=(
            pl.BlockSpec((tm_eff, Cp), act),
            pl.BlockSpec((tm_eff, D), act),
        ),
        compiler_params=pltpu.CompilerParams(
            dimension_semantics=("parallel",)),
        cost_estimate=cost,
    )(y, params["w1"], params["b1"], params["w2"], params["b2"],
      params["wh"], params["bh"])

    return out_p[:B, :C], feat_p[:B]


def init_params(key, embed_dim=EMBED_DIM, num_classes=NUM_CLASSES):
    """Deterministic synthetic parameters; nn.Linear weights stored
    pre-transposed as (in_dim, out_dim). Weights kept in bfloat16
    (MXU-native); head weight/bias zero-padded to 128 output lanes."""
    k1, k2, k3 = jax.random.split(key, 3)
    s = 1.0 / jnp.sqrt(jnp.float32(embed_dim))
    w1 = jax.random.uniform(k1, (embed_dim, embed_dim), jnp.float32, -s, s)
    w2 = jax.random.uniform(k2, (embed_dim, embed_dim), jnp.float32, -s, s)
    wh = jax.random.uniform(k3, (embed_dim, num_classes), jnp.float32, -s, s)
    wh_pad = jnp.zeros((embed_dim, HEAD_PAD), jnp.float32).at[:, :num_classes].set(wh)
    return {
        "w1": w1.astype(jnp.bfloat16),
        "b1": jnp.zeros((1, embed_dim), jnp.float32),
        "w2": w2.astype(jnp.bfloat16),
        "b2": jnp.zeros((1, embed_dim), jnp.float32),
        "wh": wh_pad.astype(jnp.bfloat16),
        "bh": jnp.zeros((1, HEAD_PAD), jnp.float32),
        "num_classes": num_classes,
    }


def reference(y, params):
    """Pure-JAX reference with the same bf16-weight / f32-accumulate math."""
    C = int(params["num_classes"])
    y_bf = y.astype(jnp.bfloat16)
    h = jnp.dot(y_bf, params["w1"],
                preferred_element_type=jnp.float32) + params["b1"]
    h = jnp.maximum(h, 0.0)
    g = jnp.dot(h.astype(jnp.bfloat16), params["w2"],
                preferred_element_type=jnp.float32) + params["b2"]
    g = jax.nn.sigmoid(g)
    y_feat = y * g
    logits = jnp.dot(y_feat.astype(jnp.bfloat16), params["wh"],
                     preferred_element_type=jnp.float32) + params["bh"]
    return logits[:, :C], y_feat


if __name__ == "__main__":
    key = jax.random.PRNGKey(0)
    kp, kx = jax.random.split(key)

    B = 2
    params = init_params(kp)
    # Synthetic pyramid_fuse output features (B, 512) — stands in for the
    # untranslated backbone stack's output.
    y = jax.random.normal(kx, (B, EMBED_DIM), jnp.float32)

    out, y_feat = poster_tail(y, params)
    out = jax.block_until_ready(out)
    y_feat = jax.block_until_ready(y_feat)

    ref_out, ref_feat = reference(y, params)
    assert out.shape == (B, NUM_CLASSES) and y_feat.shape == (B, EMBED_DIM)
    assert jnp.allclose(out, ref_out, atol=2e-3, rtol=2e-3)
    assert jnp.allclose(y_feat, ref_feat, atol=2e-3, rtol=2e-3)

    print("KERNEL_OK")
</pallas_src>

<mosaic_0001>
module attributes {stable_mosaic.version = 11 : i64} {
  func.func @poster_tail_kernel(%arg0: i32, %arg1: memref<8x512xf32, #tpu.memory_space<vmem>>, %arg2: memref<512x512xbf16, #tpu.memory_space<vmem>>, %arg3: memref<1x512xf32, #tpu.memory_space<vmem>>, %arg4: memref<512x512xbf16, #tpu.memory_space<vmem>>, %arg5: memref<1x512xf32, #tpu.memory_space<vmem>>, %arg6: memref<512x128xbf16, #tpu.memory_space<vmem>>, %arg7: memref<1x128xf32, #tpu.memory_space<vmem>>, %arg8: memref<8x128xf32, #tpu.memory_space<vmem>>, %arg9: memref<8x512xf32, #tpu.memory_space<vmem>>) attributes {dimension_semantics = [#tpu.dimension_semantics<parallel>], iteration_bounds = array<i64: 1>, scalar_prefetch = 0 : i64, scratch_operands = 0 : i64, tpu.core_type = #tpu.core_type<tc>, window_params = [{transform_indices = @transform_0, window_bounds = array<i64: 8, 512>}, {pipeline_mode = #tpu.pipeline_mode<synchronous>, transform_indices = @transform_1, window_bounds = array<i64: 512, 512>}, {pipeline_mode = #tpu.pipeline_mode<synchronous>, transform_indices = @transform_2, window_bounds = array<i64: 1, 512>}, {pipeline_mode = #tpu.pipeline_mode<synchronous>, transform_indices = @transform_3, window_bounds = array<i64: 512, 512>}, {pipeline_mode = #tpu.pipeline_mode<synchronous>, transform_indices = @transform_4, window_bounds = array<i64: 1, 512>}, {pipeline_mode = #tpu.pipeline_mode<synchronous>, transform_indices = @transform_5, window_bounds = array<i64: 512, 128>}, {pipeline_mode = #tpu.pipeline_mode<synchronous>, transform_indices = @transform_6, window_bounds = array<i64: 1, 128>}, {transform_indices = @transform_7, window_bounds = array<i64: 8, 128>}, {transform_indices = @transform_8, window_bounds = array<i64: 8, 512>}]} {
    %c0 = arith.constant 0 : index
    %c0_0 = arith.constant 0 : index
    %0 = vector.load %arg1[%c0, %c0_0] : memref<8x512xf32, #tpu.memory_space<vmem>>, vector<8x512xf32>
    %1 = arith.truncf %0 : vector<8x512xf32> to vector<8x512xbf16>
    %c0_1 = arith.constant 0 : index
    %c0_2 = arith.constant 0 : index
    %2 = vector.load %arg2[%c0_1, %c0_2] : memref<512x512xbf16, #tpu.memory_space<vmem>>, vector<512x512xbf16>
    %cst = arith.constant dense<0.000000e+00> : vector<8x512xf32>
    %3 = tpu.matmul %1, %2, %cst {dimension_numbers = #tpu.dot_dimension_numbers<[1], [0], [0], [1], [0, 0, 1, 1], [], []>} : vector<8x512xbf16>, vector<512x512xbf16>, vector<8x512xf32> -> vector<8x512xf32>
    %c0_3 = arith.constant 0 : index
    %c0_4 = arith.constant 0 : index
    %4 = vector.load %arg3[%c0_3, %c0_4] : memref<1x512xf32, #tpu.memory_space<vmem>>, vector<1x512xf32>
    %5 = vector.broadcast %4 : vector<1x512xf32> to vector<8x512xf32>
    %6 = arith.addf %3, %5 : vector<8x512xf32>
    %cst_5 = arith.constant 0.000000e+00 : f32
    %7 = vector.broadcast %cst_5 : f32 to vector<8x512xf32>
    %8 = arith.maximumf %6, %7 : vector<8x512xf32>
    %9 = arith.truncf %8 : vector<8x512xf32> to vector<8x512xbf16>
    %c0_6 = arith.constant 0 : index
    %c0_7 = arith.constant 0 : index
    %10 = vector.load %arg4[%c0_6, %c0_7] : memref<512x512xbf16, #tpu.memory_space<vmem>>, vector<512x512xbf16>
    %cst_8 = arith.constant dense<0.000000e+00> : vector<8x512xf32>
    %11 = tpu.matmul %9, %10, %cst_8 {dimension_numbers = #tpu.dot_dimension_numbers<[1], [0], [0], [1], [0, 0, 1, 1], [], []>} : vector<8x512xbf16>, vector<512x512xbf16>, vector<8x512xf32> -> vector<8x512xf32>
    %c0_9 = arith.constant 0 : index
    %c0_10 = arith.constant 0 : index
    %12 = vector.load %arg5[%c0_9, %c0_10] : memref<1x512xf32, #tpu.memory_space<vmem>>, vector<1x512xf32>
    %13 = vector.broadcast %12 : vector<1x512xf32> to vector<8x512xf32>
    %14 = arith.addf %11, %13 : vector<8x512xf32>
    %15 = arith.negf %14 : vector<8x512xf32>
    %16 = math.exp %15 : vector<8x512xf32>
    %cst_11 = arith.constant 1.000000e+00 : f32
    %17 = vector.broadcast %cst_11 : f32 to vector<8x512xf32>
    %18 = arith.addf %17, %16 : vector<8x512xf32>
    %19 = arith.divf %17, %18 : vector<8x512xf32>
    %20 = arith.mulf %0, %19 : vector<8x512xf32>
    %c0_12 = arith.constant 0 : index
    %c0_13 = arith.constant 0 : index
    %21 = vector.load %arg9[%c0_12, %c0_13] : memref<8x512xf32, #tpu.memory_space<vmem>>, vector<8x512xf32>
    tpu.vector_store %arg9[%c0_12, %c0_13], %20 {strides = array<i32>} : memref<8x512xf32, #tpu.memory_space<vmem>>, vector<8x512xf32>,
    %22 = arith.truncf %20 : vector<8x512xf32> to vector<8x512xbf16>
    %c0_14 = arith.constant 0 : index
    %c0_15 = arith.constant 0 : index
    %23 = vector.load %arg6[%c0_14, %c0_15] : memref<512x128xbf16, #tpu.memory_space<vmem>>, vector<512x128xbf16>
    %cst_16 = arith.constant dense<0.000000e+00> : vector<8x128xf32>
    %24 = tpu.matmul %22, %23, %cst_16 {dimension_numbers = #tpu.dot_dimension_numbers<[1], [0], [0], [1], [0, 0, 1, 1], [], []>} : vector<8x512xbf16>, vector<512x128xbf16>, vector<8x128xf32> -> vector<8x128xf32>
    %c0_17 = arith.constant 0 : index
    %c0_18 = arith.constant 0 : index
    %25 = vector.load %arg7[%c0_17, %c0_18] : memref<1x128xf32, #tpu.memory_space<vmem>>, vector<1x128xf32>
    %26 = vector.broadcast %25 : vector<1x128xf32> to vector<8x128xf32>
    %27 = arith.addf %24, %26 : vector<8x128xf32>
    %c0_19 = arith.constant 0 : index
    %c0_20 = arith.constant 0 : index
    %28 = vector.load %arg8[%c0_19, %c0_20] : memref<8x128xf32, #tpu.memory_space<vmem>>, vector<8x128xf32>
    tpu.vector_store %arg8[%c0_19, %c0_20], %27 {strides = array<i32>} : memref<8x128xf32, #tpu.memory_space<vmem>>, vector<8x128xf32>,
    return
  }
  func.func @transform_0(%arg0: i32) -> (i32, i32) {
    %c0_i32 = arith.constant 0 : i32
    %c0_i32_0 = arith.constant 0 : i32
    return %arg0, %c0_i32 : i32, i32
  }
  func.func @transform_1(%arg0: i32) -> (i32, i32) {
    %c0_i32 = arith.constant 0 : i32
    %c0_i32_0 = arith.constant 0 : i32
    %c0_i32_1 = arith.constant 0 : i32
    return %c0_i32, %c0_i32_0 : i32, i32
  }
  func.func @transform_2(%arg0: i32) -> (i32, i32) {
    %c0_i32 = arith.constant 0 : i32
    %c0_i32_0 = arith.constant 0 : i32
    %c0_i32_1 = arith.constant 0 : i32
    return %c0_i32, %c0_i32_0 : i32, i32
  }
  func.func @transform_3(%arg0: i32) -> (i32, i32) {
    %c0_i32 = arith.constant 0 : i32
    %c0_i32_0 = arith.constant 0 : i32
    %c0_i32_1 = arith.constant 0 : i32
    return %c0_i32, %c0_i32_0 : i32, i32
  }
  func.func @transform_4(%arg0: i32) -> (i32, i32) {
    %c0_i32 = arith.constant 0 : i32
    %c0_i32_0 = arith.constant 0 : i32
    %c0_i32_1 = arith.constant 0 : i32
    return %c0_i32, %c0_i32_0 : i32, i32
  }
  func.func @transform_5(%arg0: i32) -> (i32, i32) {
    %c0_i32 = arith.constant 0 : i32
    %c0_i32_0 = arith.constant 0 : i32
    %c0_i32_1 = arith.constant 0 : i32
    return %c0_i32, %c0_i32_0 : i32, i32
  }
  func.func @transform_6(%arg0: i32) -> (i32, i32) {
    %c0_i32 = arith.constant 0 : i32
    %c0_i32_0 = arith.constant 0 : i32
    %c0_i32_1 = arith.constant 0 : i32
    return %c0_i32, %c0_i32_0 : i32, i32
  }
  func.func @transform_7(%arg0: i32) -> (i32, i32) {
    %c0_i32 = arith.constant 0 : i32
    %c0_i32_0 = arith.constant 0 : i32
    return %arg0, %c0_i32 : i32, i32
  }
  func.func @transform_8(%arg0: i32) -> (i32, i32) {
    %c0_i32 = arith.constant 0 : i32
    %c0_i32_0 = arith.constant 0 : i32
    return %arg0, %c0_i32 : i32, i32
  }
}

</mosaic_0001>

<bundles_post_ra>
// kernel: tpu_custom_call.1
= control target key start
LH: loop header
LB: loop body
LE: loop exit
PB: predicated region body
PF: predicated region fallthrough
CT: control target
= control target key end

     0   :  { %14 = vsyncpa [#allocation3], 0  ;;  %s3541_s0 = inlined_call_operand.hbm [shape: f32[8,512], index: 0, kind: input, shape index: {}]   ;;  %s3542_s1 = inlined_call_operand.hbm [shape: bf16[512,512], index: 1, kind: input, shape index: {}]   ;;  %s3543_s2 = inlined_call_operand.vmem [shape: f32[1,512], index: 2, kind: input, shape index: {}]   ;;  %s3544_s3 = inlined_call_operand.hbm [shape: bf16[512,512], index: 3, kind: input, shape index: {}]   ;;  %s3545_s4 = inlined_call_operand.vmem [shape: f32[1,512], index: 4, kind: input, shape index: {}]   ;;  %s3546_s5 = inlined_call_operand.hbm [shape: bf16[512,128], index: 5, kind: input, shape index: {}]   ;;  %s3547_s6 = inlined_call_operand.vmem [shape: f32[1,128], index: 6, kind: input, shape index: {}]   ;;  %s3548_s7 = inlined_call_operand.hbm [shape: f32[8,128], index: 7, kind: output, shape index: {0}]   ;;  %s3549_s8 = inlined_call_operand.hbm [shape: f32[8,512], index: 8, kind: output, shape index: {1}]  }
   0x1   :  { %15 = vsyncpa [#allocation6], 0 }
   0x2   :  { %16 = vsyncpa [#allocation9], 0 }
   0x3   :  { %17 = vsyncpa [#allocation4], 0 }
   0x4   :  { %18 = vsyncpa [#allocation12], 0  ;;  %s3368_s27 = smov [#allocation5]   ;;  %s3226_s9 = scalar_lea.hbm %s3542_s1, 16384 }
   0x5   :  { %s34_s28 = sshll.u32 %s3368_s27, 4  ;;  %p3227_p0 = scmp.ne.s32.totalorder %s3542_s1, %s3226_s9  ;;  %s35_s28 = int_to_ptr.vmem [resolvable:$true] %s34_s28 }
   0x6   :  { %p3230_p1 = scmp.lt.u32.totalorder %s3226_s9, %s3542_s1 }
   0x8   :  { %p3232_p2 = pnand %p3230_p1, %p3227_p0 }
   0xa   :  { %3235 = shalt.err (!%p3232_p2)
}
   0xb   :  { %s3236_s14 = scalar_lea.vmem %s35_s28, 16384  ;;  %p3241_p4 = scmp.lt.s32.totalorder %s35_s28, %s35_s28 }
   0xc   :  { %p3237_p3 = scmp.ne.s32.totalorder %s35_s28, %s3236_s14  ;;  %p3242_p5 = scmp.lt.s32.totalorder %s3236_s14, %s3236_s14 }
   0xe   :  { %p3243_p6 = por %p3242_p5, %p3241_p4 }
  0x10   :  { %p3244_p7 = pnand %p3243_p6, %p3237_p3 }
  0x12   :  { %3247 = shalt.err (!%p3244_p7)
}
  0x13   :  { %s3369_s15 = smov 256   ;;  %s3370_s16 = smov 16  }
  0x14   :  { %40 = dma.hbm_to_vmem [thread:$0]  %s3542_s1, 16384, %s35_s28, [#allocation6], %s3369_s15, %s3369_s15, %s3370_s16  }
  0x15   :  { %s3371_s19 = smov [#allocation2]   ;;  %s3372_s21 = smov [#allocation7]  }
  0x16   :  { %s25_s20 = sshll.u32 %s3371_s19, 4  ;;  %s48_s22 = sshll.u32 %s3372_s21, 4  ;;  %s26_s20 = int_to_ptr.vmem [resolvable:$true] %s25_s20  ;;  %s49_s22 = int_to_ptr.vmem [resolvable:$true] %s48_s22 }
  0x17   :  { %s3248_s25 = scalar_lea.hbm %s3541_s0, 512 }
  0x18   :  { %p3249_p8 = scmp.ne.s32.totalorder %s3541_s0, %s3248_s25  ;;  %p3252_p9 = scmp.lt.u32.totalorder %s3248_s25, %s3541_s0 }
  0x1a   :  { %p3254_p10 = pnand %p3252_p9, %p3249_p8 }
  0x1c   :  { %3257 = shalt.err (!%p3254_p10)
}
  0x1d   :  { %s3258_s1 = scalar_lea.vmem %s26_s20, 512  ;;  %p3263_p12 = scmp.lt.s32.totalorder %s26_s20, %s26_s20 }
  0x1e   :  { %p3259_p11 = scmp.ne.s32.totalorder %s26_s20, %s3258_s1  ;;  %p3264_p13 = scmp.lt.s32.totalorder %s3258_s1, %s3258_s1 }
  0x20   :  { %p3265_p0 = por %p3264_p13, %p3263_p12 }
  0x22   :  { %p3266_p1 = pnand %p3265_p0, %p3259_p11 }
  0x24   :  { %3269 = shalt.err (!%p3266_p1)
}
  0x25   :  { %28 = dma.hbm_to_vmem [thread:$0]  %s3541_s0, 512, %s26_s20, [#allocation3]  }
  0x26   :  { %s3270_s12 = scalar_lea.hbm %s3544_s3, 16384 }
  0x27   :  { %p3271_p2 = scmp.ne.s32.totalorder %s3544_s3, %s3270_s12  ;;  %p3274_p3 = scmp.lt.u32.totalorder %s3270_s12, %s3544_s3 }
  0x29   :  { %p3276_p4 = pnand %p3274_p3, %p3271_p2 }
  0x2b   :  { %3279 = shalt.err (!%p3276_p4)
}
  0x2c   :  { %s3280_s19 = scalar_lea.vmem %s49_s22, 16384  ;;  %p3285_p6 = scmp.lt.s32.totalorder %s49_s22, %s49_s22 }
  0x2d   :  { %p3281_p5 = scmp.ne.s32.totalorder %s49_s22, %s3280_s19  ;;  %p3286_p7 = scmp.lt.s32.totalorder %s3280_s19, %s3280_s19 }
  0x2f   :  { %p3287_p8 = por %p3286_p7, %p3285_p6 }
  0x31   :  { %p3288_p9 = pnand %p3287_p8, %p3281_p5 }
  0x33   :  { %3291 = shalt.err (!%p3288_p9)
}
  0x34   :  { %54 = dma.hbm_to_vmem [thread:$0]  %s3544_s3, 16384, %s49_s22, [#allocation6], %s3369_s15, %s3369_s15, %s3370_s16  }
  0x35   :  { %s3373_s21 = smov [#allocation8]   ;;  %s3292_s26 = scalar_lea.hbm %s3546_s5, 4096 }
  0x36   :  { %s62_s23 = sshll.u32 %s3373_s21, 4  ;;  %p3293_p10 = scmp.ne.s32.totalorder %s3546_s5, %s3292_s26  ;;  %s63_s23 = int_to_ptr.vmem [resolvable:$true] %s62_s23 }
  0x37   :  { %p3296_p11 = scmp.lt.u32.totalorder %s3292_s26, %s3546_s5 }
  0x39   :  { %p3298_p12 = pnand %p3296_p11, %p3293_p10 }
  0x3b   :  { %3301 = shalt.err (!%p3298_p12)
}
  0x3c   :  { %s3302_s28 = scalar_lea.vmem %s63_s23, 4096  ;;  %p3307_p0 = scmp.lt.s32.totalorder %s63_s23, %s63_s23 }
  0x3d   :  { %p3303_p13 = scmp.ne.s32.totalorder %s63_s23, %s3302_s28  ;;  %p3308_p1 = scmp.lt.s32.totalorder %s3302_s28, %s3302_s28 }
  0x3f   :  { %p3309_p2 = por %p3308_p1, %p3307_p0 }
  0x41   :  { %p3310_p3 = pnand %p3309_p2, %p3303_p13 }
  0x43   :  { %3313 = shalt.err (!%p3310_p3)
}
  0x44   :  { %s3374_s3 = smov 64   ;;  %s3375_s15 = smov 4  }
  0x45   :  { %68 = dma.hbm_to_vmem [thread:$0]  %s3546_s5, 4096, %s63_s23, [#allocation9], %s3374_s3, %s3374_s3, %s3375_s15  }
  0x46   :  { %3358 = dma.done.wait [#allocation3], 512  }
  0x47   :  { %3359 = vsyncadd [#allocation3], 4294966784 }
  0x48   :  { %3360 = dma.done.wait [#allocation6], 32768  }
  0x49   :  { %3361 = vsyncadd [#allocation6], 4294934528 }
  0x4a   :  { %3362 = dma.done.wait [#allocation9], 4096  }
  0x4b   :  { %3363 = vsyncadd [#allocation9], 4294963200  ;;  %v2790_v0 = vld [vmem:[#allocation5 + $0x4] ss:$16 sps:$4 sm:$0xff]   ;;  %v2792_v1 = vld [vmem:[#allocation5 + $0xc] ss:$16 sps:$4 sm:$0xff]  }
  0x4c   :  { %882 = vmatprep.subr.bf16.mxu0 %v2790_v0  ;;  %v2794_v2 = vld [vmem:[#allocation5] ss:$16 sps:$4 sm:$0xff]   ;;  %v2795_v3 = vld [vmem:[#allocation5 + $0x8] ss:$16 sps:$4 sm:$0xff]   ;;  %964 = vmatprep.subr.bf16.mxu1 %v2792_v1  ;;  %v2796_v4 = vld [vmem:[#allocation5 + $0x24] ss:$16 sps:$4 sm:$0xff]  }
  0x4d   :  { %883 = vmatpush1.bf16.msra.mxu0 %v2794_v2  ;;  %965 = vmatpush1.bf16.msra.mxu1 %v2795_v3  ;;  %v2798_v5 = vld [vmem:[#allocation5 + $0x2c] ss:$16 sps:$4 sm:$0xff]   ;;  %v2800_v6 = vld [vmem:[#allocation5 + $0x20] ss:$16 sps:$4 sm:$0xff]   ;;  %v2801_v7 = vld [vmem:[#allocation5 + $0x28] ss:$16 sps:$4 sm:$0xff]  }
  0x4e   :  { %884 = vmatprep.subr.bf16.mxu0 %v2796_v4  ;;  %966 = vmatprep.subr.bf16.mxu1 %v2798_v5  ;;  %v2802_v8 = vld [vmem:[#allocation5 + $0x44] ss:$16 sps:$4 sm:$0xff]   ;;  %v2804_v9 = vld [vmem:[#allocation5 + $0x4c] ss:$16 sps:$4 sm:$0xff]   ;;  %v2806_v10 = vld [vmem:[#allocation5 + $0x40] ss:$16 sps:$4 sm:$0xff]  }
  0x4f   :  { %v2807_v11 = vld [vmem:[#allocation5 + $0x48] ss:$16 sps:$4 sm:$0xff]   ;;  %v2808_v12 = vld [vmem:[#allocation5 + $0x64] ss:$16 sps:$4 sm:$0xff]   ;;  %v2810_v13 = vld [vmem:[#allocation5 + $0x6c] ss:$16 sps:$4 sm:$0xff]  }
  0x50   :  { %v2812_v14 = vld [vmem:[#allocation5 + $0x60] ss:$16 sps:$4 sm:$0xff]   ;;  %v2813_v15 = vld [vmem:[#allocation5 + $0x68] ss:$16 sps:$4 sm:$0xff]   ;;  %v2814_v16 = vld [vmem:[#allocation5 + $0x84] ss:$16 sps:$4 sm:$0xff]  }
  0x51   :  { %885 = vmatpush1.bf16.msra.mxu0 %v2800_v6  ;;  %967 = vmatpush1.bf16.msra.mxu1 %v2801_v7  ;;  %v2816_v17 = vld [vmem:[#allocation5 + $0x8c] ss:$16 sps:$4 sm:$0xff]   ;;  %v2818_v18 = vld [vmem:[#allocation5 + $0x80] ss:$16 sps:$4 sm:$0xff]   ;;  %v2819_v19 = vld [vmem:[#allocation5 + $0x88] ss:$16 sps:$4 sm:$0xff]  }
  0x52   :  { %886 = vmatprep.subr.bf16.mxu0 %v2802_v8  ;;  %968 = vmatprep.subr.bf16.mxu1 %v2804_v9  ;;  %v2820_v20 = vld [vmem:[#allocation5 + $0xa4] ss:$16 sps:$4 sm:$0xff]   ;;  %v2822_v21 = vld [vmem:[#allocation5 + $0xac] ss:$16 sps:$4 sm:$0xff]   ;;  %v2824_v22 = vld [vmem:[#allocation5 + $0xa0] ss:$16 sps:$4 sm:$0xff]  }
  0x53   :  { %v2825_v23 = vld [vmem:[#allocation5 + $0xa8] ss:$16 sps:$4 sm:$0xff]   ;;  %v2826_v24 = vld [vmem:[#allocation5 + $0xc4] ss:$16 sps:$4 sm:$0xff]   ;;  %v2828_v25 = vld [vmem:[#allocation5 + $0xcc] ss:$16 sps:$4 sm:$0xff]  }
  0x54   :  { %v2830_v26 = vld [vmem:[#allocation5 + $0xc0] ss:$16 sps:$4 sm:$0xff]   ;;  %v2831_v27 = vld [vmem:[#allocation5 + $0xc8] ss:$16 sps:$4 sm:$0xff]   ;;  %v2832_v28 = vld [vmem:[#allocation5 + $0xe4] ss:$16 sps:$4 sm:$0xff]  }
  0x55   :  { %887 = vmatpush1.bf16.msra.mxu0 %v2806_v10  ;;  %969 = vmatpush1.bf16.msra.mxu1 %v2807_v11  ;;  %v2834_v29 = vld [vmem:[#allocation5 + $0xec] ss:$16 sps:$4 sm:$0xff]   ;;  %v2836_v30 = vld [vmem:[#allocation5 + $0xe0] ss:$16 sps:$4 sm:$0xff]   ;;  %v2837_v31 = vld [vmem:[#allocation5 + $0xe8] ss:$16 sps:$4 sm:$0xff]  }
  0x56   :  { %888 = vmatprep.subr.bf16.mxu0 %v2808_v12  ;;  %970 = vmatprep.subr.bf16.mxu1 %v2810_v13  ;;  %v2838_v32 = vld [vmem:[#allocation5 + $0x104] ss:$16 sps:$4 sm:$0xff]   ;;  %v2840_v33 = vld [vmem:[#allocation5 + $0x10c] ss:$16 sps:$4 sm:$0xff]   ;;  %v2842_v34 = vld [vmem:[#allocation5 + $0x100] ss:$16 sps:$4 sm:$0xff]  }
  0x57   :  { %v2843_v35 = vld [vmem:[#allocation5 + $0x108] ss:$16 sps:$4 sm:$0xff]   ;;  %v2844_v36 = vld [vmem:[#allocation5 + $0x124] ss:$16 sps:$4 sm:$0xff]   ;;  %v2846_v37 = vld [vmem:[#allocation5 + $0x12c] ss:$16 sps:$4 sm:$0xff]  }
  0x58   :  { %v2848_v38 = vld [vmem:[#allocation5 + $0x120] ss:$16 sps:$4 sm:$0xff]   ;;  %v2849_v39 = vld [vmem:[#allocation5 + $0x128] ss:$16 sps:$4 sm:$0xff]   ;;  %v2850_v40 = vld [vmem:[#allocation5 + $0x144] ss:$16 sps:$4 sm:$0xff]  }
  0x59   :  { %889 = vmatpush1.bf16.msra.mxu0 %v2812_v14  ;;  %971 = vmatpush1.bf16.msra.mxu1 %v2813_v15  ;;  %v2852_v41 = vld [vmem:[#allocation5 + $0x14c] ss:$16 sps:$4 sm:$0xff]   ;;  %v2854_v42 = vld [vmem:[#allocation5 + $0x140] ss:$16 sps:$4 sm:$0xff]   ;;  %v2855_v43 = vld [vmem:[#allocation5 + $0x148] ss:$16 sps:$4 sm:$0xff]  }
  0x5a   :  { %890 = vmatprep.subr.bf16.mxu0 %v2814_v16  ;;  %972 = vmatprep.subr.bf16.mxu1 %v2816_v17  ;;  %v2856_v44 = vld [vmem:[#allocation5 + $0x164] ss:$16 sps:$4 sm:$0xff]   ;;  %v2858_v45 = vld [vmem:[#allocation5 + $0x16c] ss:$16 sps:$4 sm:$0xff]   ;;  %v2860_v47 = vld [vmem:[#allocation5 + $0x160] ss:$16 sps:$4 sm:$0xff]  }
  0x5b   :  { %v85_v46 = vld [vmem:[#allocation2 + $0x8] sm:$0xff]  ;;  %v2862_v50 = vld [vmem:[#allocation5 + $0x184] ss:$16 sps:$4 sm:$0xff]   ;;  %v2866_v52 = vld [vmem:[#allocation5 + $0x180] ss:$16 sps:$4 sm:$0xff]  }
  0x5c   :  { %v89_v48 = vpack.c.bf16 %v85_v46, %v85_v46  ;;  %v2861_v49 = vld [vmem:[#allocation5 + $0x168] ss:$16 sps:$4 sm:$0xff]   ;;  %v2864_v51 = vld [vmem:[#allocation5 + $0x18c] ss:$16 sps:$4 sm:$0xff]   ;;  %v2868_v54 = vld [vmem:[#allocation5 + $0x1a4] ss:$16 sps:$4 sm:$0xff]  }
  0x5d   :  { %891 = vmatpush1.bf16.msra.mxu0 %v2818_v18  ;;  %973 = vmatpush1.bf16.msra.mxu1 %v2819_v19  ;;  %v2867_v53 = vld [vmem:[#allocation5 + $0x188] ss:$16 sps:$4 sm:$0xff]   ;;  %v2870_v55 = vld [vmem:[#allocation5 + $0x1ac] ss:$16 sps:$4 sm:$0xff]   ;;  %v2872_v56 = vld [vmem:[#allocation5 + $0x1a0] ss:$16 sps:$4 sm:$0xff]  }
  0x5e   :  { %892 = vmatprep.subr.bf16.mxu0 %v2820_v20  ;;  %974 = vmatprep.subr.bf16.mxu1 %v2822_v21  ;;  %v2873_v57 = vld [vmem:[#allocation5 + $0x1a8] ss:$16 sps:$4 sm:$0xff]   ;;  %v2874_v58 = vld [vmem:[#allocation5 + $0x1c4] ss:$16 sps:$4 sm:$0xff]   ;;  %v2876_v59 = vld [vmem:[#allocation5 + $0x1cc] ss:$16 sps:$4 sm:$0xff]  }
  0x5f   :  { %914 = vmatprep.mubr.bf16.mxu0 %v89_v48  ;;  %996 = vmatprep.mubr.bf16.mxu1 %v89_v48  ;;  %v2878_v60 = vld [vmem:[#allocation5 + $0x1c0] ss:$16 sps:$4 sm:$0xff]   ;;  %v2879_v61 = vld [vmem:[#allocation5 + $0x1c8] ss:$16 sps:$4 sm:$0xff]   ;;  %v2880_v62 = vld [vmem:[#allocation5 + $0x1e4] ss:$16 sps:$4 sm:$0xff]  }
  0x60   :  { %v2882_v63 = vld [vmem:[#allocation5 + $0x1ec] ss:$16 sps:$4 sm:$0xff]   ;;  %v2884_v0 = vld [vmem:[#allocation5 + $0x1e0] ss:$16 sps:$4 sm:$0xff]   ;;  %v2885_v1 = vld [vmem:[#allocation5 + $0x1e8] ss:$16 sps:$4 sm:$0xff]  }
  0x61   :  { %893 = vmatpush1.bf16.msra.mxu0 %v2824_v22  ;;  %975 = vmatpush1.bf16.msra.mxu1 %v2825_v23  ;;  %v84_v2 = vld [vmem:[#allocation2] sm:$0xff]  ;;  %v2891_v4 = vld [vmem:[#allocation5 + $0x20c] ss:$16 sps:$4 sm:$0xff]   ;;  %v2889_v7 = vld [vmem:[#allocation5 + $0x208] ss:$16 sps:$4 sm:$0xff]  }
  0x62   :  { %894 = vmatprep.subr.bf16.mxu0 %v2826_v24  ;;  %976 = vmatprep.subr.bf16.mxu1 %v2828_v25  ;;  %v2888_v3 = vld [vmem:[#allocation5 + $0x204] ss:$16 sps:$4 sm:$0xff]   ;;  %v88_v5 = vpack.c.bf16 %v84_v2, %v84_v2  ;;  %v2886_v6 = vld [vmem:[#allocation5 + $0x200] ss:$16 sps:$4 sm:$0xff]   ;;  %v2897_v9 = vld [vmem:[#allocation5 + $0x22c] ss:$16 sps:$4 sm:$0xff]  }
  0x63   :  { %v2894_v8 = vld [vmem:[#allocation5 + $0x224] ss:$16 sps:$4 sm:$0xff]   ;;  %v2892_v10 = vld [vmem:[#allocation5 + $0x220] ss:$16 sps:$4 sm:$0xff]   ;;  %v2895_v11 = vld [vmem:[#allocation5 + $0x228] ss:$16 sps:$4 sm:$0xff]  }
  0x64   :  { %v2900_v12 = vld [vmem:[#allocation5 + $0x244] ss:$16 sps:$4 sm:$0xff]   ;;  %v2903_v13 = vld [vmem:[#allocation5 + $0x24c] ss:$16 sps:$4 sm:$0xff]   ;;  %v2898_v14 = vld [vmem:[#allocation5 + $0x240] ss:$16 sps:$4 sm:$0xff]  }
  0x65   :  { %895 = vmatpush1.bf16.msra.mxu0 %v2830_v26  ;;  %977 = vmatpush1.bf16.msra.mxu1 %v2831_v27  ;;  %v2901_v15 = vld [vmem:[#allocation5 + $0x248] ss:$16 sps:$4 sm:$0xff]   ;;  %v2906_v16 = vld [vmem:[#allocation5 + $0x264] ss:$16 sps:$4 sm:$0xff]   ;;  %v2909_v17 = vld [vmem:[#allocation5 + $0x26c] ss:$16 sps:$4 sm:$0xff]  }
  0x66   :  { %896 = vmatprep.subr.bf16.mxu0 %v2832_v28  ;;  %978 = vmatprep.subr.bf16.mxu1 %v2834_v29  ;;  %v2904_v18 = vld [vmem:[#allocation5 + $0x260] ss:$16 sps:$4 sm:$0xff]   ;;  %v2907_v19 = vld [vmem:[#allocation5 + $0x268] ss:$16 sps:$4 sm:$0xff]   ;;  %v2912_v20 = vld [vmem:[#allocation5 + $0x284] ss:$16 sps:$4 sm:$0xff]  }
  0x67   :  { %v2915_v21 = vld [vmem:[#allocation5 + $0x28c] ss:$16 sps:$4 sm:$0xff]   ;;  %v2910_v22 = vld [vmem:[#allocation5 + $0x280] ss:$16 sps:$4 sm:$0xff]   ;;  %v2913_v23 = vld [vmem:[#allocation5 + $0x288] ss:$16 sps:$4 sm:$0xff]  }
  0x68   :  { %v2918_v24 = vld [vmem:[#allocation5 + $0x2a4] ss:$16 sps:$4 sm:$0xff]   ;;  %v2921_v25 = vld [vmem:[#allocation5 + $0x2ac] ss:$16 sps:$4 sm:$0xff]   ;;  %v2916_v26 = vld [vmem:[#allocation5 + $0x2a0] ss:$16 sps:$4 sm:$0xff]  }
  0x69   :  { %897 = vmatpush1.bf16.msra.mxu0 %v2836_v30  ;;  %979 = vmatpush1.bf16.msra.mxu1 %v2837_v31  ;;  %v2919_v27 = vld [vmem:[#allocation5 + $0x2a8] ss:$16 sps:$4 sm:$0xff]   ;;  %v2924_v28 = vld [vmem:[#allocation5 + $0x2c4] ss:$16 sps:$4 sm:$0xff]   ;;  %v2927_v29 = vld [vmem:[#allocation5 + $0x2cc] ss:$16 sps:$4 sm:$0xff]  }
  0x6a   :  { %898 = vmatprep.subr.bf16.mxu0 %v2838_v32  ;;  %980 = vmatprep.subr.bf16.mxu1 %v2840_v33  ;;  %v87_v30 = vld [vmem:[#allocation2 + $0x18] sm:$0xff]  ;;  %v2922_v31 = vld [vmem:[#allocation5 + $0x2c0] ss:$16 sps:$4 sm:$0xff]   ;;  %v2948_v46 = vld [vmem:[#allocation5 + $0x344] ss:$16 sps:$4 sm:$0xff]  }
  0x6b   :  { %v2925_v32 = vld [vmem:[#allocation5 + $0x2c8] ss:$16 sps:$4 sm:$0xff]   ;;  %v91_v33 = vpack.c.bf16 %v87_v30, %v87_v30  ;;  %v2946_v48 = vld [vmem:[#allocation5 + $0x340] ss:$16 sps:$4 sm:$0xff]   ;;  %v2978_v2 = vld [vmem:[#allocation5 + $0x3e4] ss:$16 sps:$4 sm:$0xff]  }
  0x6c   :  { %v3012_v30 = vld [vmem:[#allocation7 + $0xa0] ss:$16 sps:$4 sm:$0xff]  }
  0x6d   :  { %899 = vmatpush1.bf16.msra.mxu0 %v2842_v34  ;;  %981 = vmatpush1.bf16.msra.mxu1 %v2843_v35  ;;  %v2930_v34 = vld [vmem:[#allocation5 + $0x2e4] ss:$16 sps:$4 sm:$0xff]   ;;  %v2933_v35 = vld [vmem:[#allocation5 + $0x2ec] ss:$16 sps:$4 sm:$0xff]  }
  0x6e   :  { %900 = vmatprep.subr.bf16.mxu0 %v2844_v36  ;;  %982 = vmatprep.subr.bf16.mxu1 %v2846_v37  ;;  %v2928_v36 = vld [vmem:[#allocation5 + $0x2e0] ss:$16 sps:$4 sm:$0xff]   ;;  %v2931_v37 = vld [vmem:[#allocation5 + $0x2e8] ss:$16 sps:$4 sm:$0xff]  }
  0x71   :  { %901 = vmatpush1.bf16.msra.mxu0 %v2848_v38  ;;  %983 = vmatpush1.bf16.msra.mxu1 %v2849_v39  ;;  %v2936_v38 = vld [vmem:[#allocation5 + $0x304] ss:$16 sps:$4 sm:$0xff]   ;;  %v2939_v39 = vld [vmem:[#allocation5 + $0x30c] ss:$16 sps:$4 sm:$0xff]  }
  0x72   :  { %902 = vmatprep.subr.bf16.mxu0 %v2850_v40  ;;  %984 = vmatprep.subr.bf16.mxu1 %v2852_v41  ;;  %v2934_v40 = vld [vmem:[#allocation5 + $0x300] ss:$16 sps:$4 sm:$0xff]   ;;  %v2937_v41 = vld [vmem:[#allocation5 + $0x308] ss:$16 sps:$4 sm:$0xff]  }
  0x75   :  { %903 = vmatpush1.bf16.msra.mxu0 %v2854_v42  ;;  %985 = vmatpush1.bf16.msra.mxu1 %v2855_v43  ;;  %v2942_v42 = vld [vmem:[#allocation5 + $0x324] ss:$16 sps:$4 sm:$0xff]   ;;  %v2945_v43 = vld [vmem:[#allocation5 + $0x32c] ss:$16 sps:$4 sm:$0xff]  }
  0x76   :  { %904 = vmatprep.subr.bf16.mxu0 %v2856_v44  ;;  %986 = vmatprep.subr.bf16.mxu1 %v2858_v45  ;;  %v2940_v44 = vld [vmem:[#allocation5 + $0x320] ss:$16 sps:$4 sm:$0xff]   ;;  %v2943_v45 = vld [vmem:[#allocation5 + $0x328] ss:$16 sps:$4 sm:$0xff]  }
  0x79   :  { %905 = vmatpush1.bf16.msra.mxu0 %v2860_v47  ;;  %987 = vmatpush1.bf16.msra.mxu1 %v2861_v49  ;;  %v2951_v47 = vld [vmem:[#allocation5 + $0x34c] ss:$16 sps:$4 sm:$0xff]   ;;  %v2949_v49 = vld [vmem:[#allocation5 + $0x348] ss:$16 sps:$4 sm:$0xff]  }
  0x7a   :  { %906 = vmatprep.subr.bf16.mxu0 %v2862_v50  ;;  %988 = vmatprep.subr.bf16.mxu1 %v2864_v51  ;;  %v2954_v50 = vld [vmem:[#allocation5 + $0x364] ss:$16 sps:$4 sm:$0xff]   ;;  %v2957_v51 = vld [vmem:[#allocation5 + $0x36c] ss:$16 sps:$4 sm:$0xff]  }
  0x7d   :  { %907 = vmatpush1.bf16.msra.mxu0 %v2866_v52  ;;  %989 = vmatpush1.bf16.msra.mxu1 %v2867_v53  ;;  %v2952_v52 = vld [vmem:[#allocation5 + $0x360] ss:$16 sps:$4 sm:$0xff]   ;;  %v2955_v53 = vld [vmem:[#allocation5 + $0x368] ss:$16 sps:$4 sm:$0xff]  }
  0x7e   :  { %908 = vmatprep.subr.bf16.mxu0 %v2868_v54  ;;  %990 = vmatprep.subr.bf16.mxu1 %v2870_v55  ;;  %v2960_v54 = vld [vmem:[#allocation5 + $0x384] ss:$16 sps:$4 sm:$0xff]   ;;  %v2963_v55 = vld [vmem:[#allocation5 + $0x38c] ss:$16 sps:$4 sm:$0xff]  }
  0x81   :  { %909 = vmatpush1.bf16.msra.mxu0 %v2872_v56  ;;  %991 = vmatpush1.bf16.msra.mxu1 %v2873_v57  ;;  %v2958_v56 = vld [vmem:[#allocation5 + $0x380] ss:$16 sps:$4 sm:$0xff]   ;;  %v2961_v57 = vld [vmem:[#allocation5 + $0x388] ss:$16 sps:$4 sm:$0xff]  }
  0x82   :  { %910 = vmatprep.subr.bf16.mxu0 %v2874_v58  ;;  %992 = vmatprep.subr.bf16.mxu1 %v2876_v59  ;;  %v2966_v58 = vld [vmem:[#allocation5 + $0x3a4] ss:$16 sps:$4 sm:$0xff]   ;;  %v2969_v59 = vld [vmem:[#allocation5 + $0x3ac] ss:$16 sps:$4 sm:$0xff]  }
  0x85   :  { %911 = vmatpush1.bf16.msra.mxu0 %v2878_v60  ;;  %993 = vmatpush1.bf16.msra.mxu1 %v2879_v61  ;;  %v2964_v60 = vld [vmem:[#allocation5 + $0x3a0] ss:$16 sps:$4 sm:$0xff]   ;;  %v2967_v61 = vld [vmem:[#allocation5 + $0x3a8] ss:$16 sps:$4 sm:$0xff]  }
  0x86   :  { %912 = vmatprep.subr.bf16.mxu0 %v2880_v62  ;;  %994 = vmatprep.subr.bf16.mxu1 %v2882_v63  ;;  %v2972_v62 = vld [vmem:[#allocation5 + $0x3c4] ss:$16 sps:$4 sm:$0xff]   ;;  %v2975_v63 = vld [vmem:[#allocation5 + $0x3cc] ss:$16 sps:$4 sm:$0xff]  }
  0x89   :  { %913 = vmatpush1.bf16.msra.mxu0 %v2884_v0  ;;  %995 = vmatpush1.bf16.msra.mxu1 %v2885_v1  ;;  %v2970_v0 = vld [vmem:[#allocation5 + $0x3c0] ss:$16 sps:$4 sm:$0xff]   ;;  %v2973_v1 = vld [vmem:[#allocation5 + $0x3c8] ss:$16 sps:$4 sm:$0xff]  }
  0x8a   :  { %923 = vmatprep.subr.bf16.mxu0 %v2888_v3  ;;  %1005 = vmatprep.subr.bf16.mxu1 %v2891_v4  ;;  %v2981_v3 = vld [vmem:[#allocation5 + $0x3ec] ss:$16 sps:$4 sm:$0xff]   ;;  %v2976_v4 = vld [vmem:[#allocation5 + $0x3e0] ss:$16 sps:$4 sm:$0xff]  }
  0x8c   :  { %915 = vmatmul.mubr.bf16.vlgmr.msra.gmra.mrb[0].mxu0 %v88_v5  ;;  %997 = vmatmul.mubr.bf16.vlgmr.msra.gmra.mrb[0].mxu1 %v88_v5  ;;  %v2979_v5 = vld [vmem:[#allocation5 + $0x3e8] ss:$16 sps:$4 sm:$0xff]  }
  0x8d   :  { %924 = vmatpush1.bf16.msra.mxu0 %v2886_v6  ;;  %1006 = vmatpush1.bf16.msra.mxu1 %v2889_v7  ;;  %v86_v6 = vld [vmem:[#allocation2 + $0x10] sm:$0xff] }
  0x8e   :  { %925 = vmatprep.subr.bf16.mxu0 %v2894_v8  ;;  %1007 = vmatprep.subr.bf16.mxu1 %v2897_v9  ;;  %v2984_v7 = vld [vmem:[#allocation7 + $0x4] ss:$16 sps:$4 sm:$0xff]   ;;  %v2987_v8 = vld [vmem:[#allocation7 + $0xc] ss:$16 sps:$4 sm:$0xff]   ;;  %v2982_v9 = vld [vmem:[#allocation7] ss:$16 sps:$4 sm:$0xff]  }
  0x8f   :  { %955 = vmatprep.mubr.bf16.mxu0 %v91_v33  ;;  %1037 = vmatprep.mubr.bf16.mxu1 %v91_v33  ;;  %v3023_v33 = vld [vmem:[#allocation7 + $0xcc] ss:$16 sps:$4 sm:$0xff]  }
  0x91   :  { %926 = vmatpush1.bf16.msra.mxu0 %v2892_v10  ;;  %1008 = vmatpush1.bf16.msra.mxu1 %v2895_v11  ;;  %v2985_v10 = vld [vmem:[#allocation7 + $0x8] ss:$16 sps:$4 sm:$0xff]   ;;  %v90_v11 = vpack.c.bf16 %v86_v6, %v86_v6  ;;  %v3072_v6 = vld [vmem:[#allocation7 + $0x1e0] ss:$16 sps:$4 sm:$0xff]  }
  0x92   :  { %927 = vmatprep.subr.bf16.mxu0 %v2900_v12  ;;  %1009 = vmatprep.subr.bf16.mxu1 %v2903_v13  ;;  %v2990_v12 = vld [vmem:[#allocation7 + $0x24] ss:$16 sps:$4 sm:$0xff]   ;;  %v2993_v13 = vld [vmem:[#allocation7 + $0x2c] ss:$16 sps:$4 sm:$0xff]  }
  0x95   :  { %928 = vmatpush1.bf16.msra.mxu0 %v2898_v14  ;;  %1010 = vmatpush1.bf16.msra.mxu1 %v2901_v15  ;;  %v2988_v14 = vld [vmem:[#allocation7 + $0x20] ss:$16 sps:$4 sm:$0xff]   ;;  %v2991_v15 = vld [vmem:[#allocation7 + $0x28] ss:$16 sps:$4 sm:$0xff]  }
  0x96   :  { %929 = vmatprep.subr.bf16.mxu0 %v2906_v16  ;;  %1011 = vmatprep.subr.bf16.mxu1 %v2909_v17  ;;  %v2996_v16 = vld [vmem:[#allocation7 + $0x44] ss:$16 sps:$4 sm:$0xff]   ;;  %v2999_v17 = vld [vmem:[#allocation7 + $0x4c] ss:$16 sps:$4 sm:$0xff]  }
  0x99   :  { %930 = vmatpush1.bf16.msra.mxu0 %v2904_v18  ;;  %1012 = vmatpush1.bf16.msra.mxu1 %v2907_v19  ;;  %v2994_v18 = vld [vmem:[#allocation7 + $0x40] ss:$16 sps:$4 sm:$0xff]   ;;  %v2997_v19 = vld [vmem:[#allocation7 + $0x48] ss:$16 sps:$4 sm:$0xff]  }
  0x9a   :  { %931 = vmatprep.subr.bf16.mxu0 %v2912_v20  ;;  %1013 = vmatprep.subr.bf16.mxu1 %v2915_v21  ;;  %v3002_v20 = vld [vmem:[#allocation7 + $0x64] ss:$16 sps:$4 sm:$0xff]   ;;  %v3005_v21 = vld [vmem:[#allocation7 + $0x6c] ss:$16 sps:$4 sm:$0xff]  }
  0x9d   :  { %932 = vmatpush1.bf16.msra.mxu0 %v2910_v22  ;;  %1014 = vmatpush1.bf16.msra.mxu1 %v2913_v23  ;;  %v3000_v22 = vld [vmem:[#allocation7 + $0x60] ss:$16 sps:$4 sm:$0xff]   ;;  %v3003_v23 = vld [vmem:[#allocation7 + $0x68] ss:$16 sps:$4 sm:$0xff]  }
  0x9e   :  { %933 = vmatprep.subr.bf16.mxu0 %v2918_v24  ;;  %1015 = vmatprep.subr.bf16.mxu1 %v2921_v25  ;;  %v3008_v24 = vld [vmem:[#allocation7 + $0x84] ss:$16 sps:$4 sm:$0xff]   ;;  %v3011_v25 = vld [vmem:[#allocation7 + $0x8c] ss:$16 sps:$4 sm:$0xff]  }
  0xa1   :  { %934 = vmatpush1.bf16.msra.mxu0 %v2916_v26  ;;  %1016 = vmatpush1.bf16.msra.mxu1 %v2919_v27  ;;  %v3006_v26 = vld [vmem:[#allocation7 + $0x80] ss:$16 sps:$4 sm:$0xff]   ;;  %v3009_v27 = vld [vmem:[#allocation7 + $0x88] ss:$16 sps:$4 sm:$0xff]  }
  0xa2   :  { %935 = vmatprep.subr.bf16.mxu0 %v2924_v28  ;;  %1017 = vmatprep.subr.bf16.mxu1 %v2927_v29  ;;  %v3014_v28 = vld [vmem:[#allocation7 + $0xa4] ss:$16 sps:$4 sm:$0xff]   ;;  %v3017_v29 = vld [vmem:[#allocation7 + $0xac] ss:$16 sps:$4 sm:$0xff]  }
  0xa5   :  { %936 = vmatpush1.bf16.msra.mxu0 %v2922_v31  ;;  %1018 = vmatpush1.bf16.msra.mxu1 %v2925_v32  ;;  %v3015_v31 = vld [vmem:[#allocation7 + $0xa8] ss:$16 sps:$4 sm:$0xff]   ;;  %v3020_v32 = vld [vmem:[#allocation7 + $0xc4] ss:$16 sps:$4 sm:$0xff]  }
  0xa6   :  { %937 = vmatprep.subr.bf16.mxu0 %v2930_v34  ;;  %1019 = vmatprep.subr.bf16.mxu1 %v2933_v35  ;;  %v3018_v34 = vld [vmem:[#allocation7 + $0xc0] ss:$16 sps:$4 sm:$0xff]   ;;  %v3021_v35 = vld [vmem:[#allocation7 + $0xc8] ss:$16 sps:$4 sm:$0xff]  }
  0xa9   :  { %938 = vmatpush1.bf16.msra.mxu0 %v2928_v36  ;;  %1020 = vmatpush1.bf16.msra.mxu1 %v2931_v37  ;;  %v3026_v36 = vld [vmem:[#allocation7 + $0xe4] ss:$16 sps:$4 sm:$0xff]   ;;  %v3029_v37 = vld [vmem:[#allocation7 + $0xec] ss:$16 sps:$4 sm:$0xff]  }
  0xaa   :  { %939 = vmatprep.subr.bf16.mxu0 %v2936_v38  ;;  %1021 = vmatprep.subr.bf16.mxu1 %v2939_v39  ;;  %v3024_v38 = vld [vmem:[#allocation7 + $0xe0] ss:$16 sps:$4 sm:$0xff]   ;;  %v3027_v39 = vld [vmem:[#allocation7 + $0xe8] ss:$16 sps:$4 sm:$0xff]  }
  0xad   :  { %940 = vmatpush1.bf16.msra.mxu0 %v2934_v40  ;;  %1022 = vmatpush1.bf16.msra.mxu1 %v2937_v41  ;;  %v3032_v40 = vld [vmem:[#allocation7 + $0x104] ss:$16 sps:$4 sm:$0xff]   ;;  %v3035_v41 = vld [vmem:[#allocation7 + $0x10c] ss:$16 sps:$4 sm:$0xff]  }
  0xae   :  { %941 = vmatprep.subr.bf16.mxu0 %v2942_v42  ;;  %1023 = vmatprep.subr.bf16.mxu1 %v2945_v43  ;;  %v3030_v42 = vld [vmem:[#allocation7 + $0x100] ss:$16 sps:$4 sm:$0xff]   ;;  %v3033_v43 = vld [vmem:[#allocation7 + $0x108] ss:$16 sps:$4 sm:$0xff]  }
  0xb1   :  { %942 = vmatpush1.bf16.msra.mxu0 %v2940_v44  ;;  %1024 = vmatpush1.bf16.msra.mxu1 %v2943_v45  ;;  %v3038_v44 = vld [vmem:[#allocation7 + $0x124] ss:$16 sps:$4 sm:$0xff]   ;;  %v3041_v45 = vld [vmem:[#allocation7 + $0x12c] ss:$16 sps:$4 sm:$0xff]  }
  0xb2   :  { %943 = vmatprep.subr.bf16.mxu0 %v2948_v46  ;;  %1025 = vmatprep.subr.bf16.mxu1 %v2951_v47  ;;  %v3036_v46 = vld [vmem:[#allocation7 + $0x120] ss:$16 sps:$4 sm:$0xff]   ;;  %v3039_v47 = vld [vmem:[#allocation7 + $0x128] ss:$16 sps:$4 sm:$0xff]  }
  0xb5   :  { %944 = vmatpush1.bf16.msra.mxu0 %v2946_v48  ;;  %1026 = vmatpush1.bf16.msra.mxu1 %v2949_v49  ;;  %v3044_v48 = vld [vmem:[#allocation7 + $0x144] ss:$16 sps:$4 sm:$0xff]   ;;  %v3047_v49 = vld [vmem:[#allocation7 + $0x14c] ss:$16 sps:$4 sm:$0xff]  }
  0xb6   :  { %945 = vmatprep.subr.bf16.mxu0 %v2954_v50  ;;  %1027 = vmatprep.subr.bf16.mxu1 %v2957_v51  ;;  %v3042_v50 = vld [vmem:[#allocation7 + $0x140] ss:$16 sps:$4 sm:$0xff]   ;;  %v3045_v51 = vld [vmem:[#allocation7 + $0x148] ss:$16 sps:$4 sm:$0xff]  }
  0xb9   :  { %946 = vmatpush1.bf16.msra.mxu0 %v2952_v52  ;;  %1028 = vmatpush1.bf16.msra.mxu1 %v2955_v53  ;;  %v3050_v52 = vld [vmem:[#allocation7 + $0x164] ss:$16 sps:$4 sm:$0xff]   ;;  %v3053_v53 = vld [vmem:[#allocation7 + $0x16c] ss:$16 sps:$4 sm:$0xff]  }
  0xba   :  { %947 = vmatprep.subr.bf16.mxu0 %v2960_v54  ;;  %1029 = vmatprep.subr.bf16.mxu1 %v2963_v55  ;;  %v3048_v54 = vld [vmem:[#allocation7 + $0x160] ss:$16 sps:$4 sm:$0xff]   ;;  %v3051_v55 = vld [vmem:[#allocation7 + $0x168] ss:$16 sps:$4 sm:$0xff]  }
  0xbd   :  { %948 = vmatpush1.bf16.msra.mxu0 %v2958_v56  ;;  %1030 = vmatpush1.bf16.msra.mxu1 %v2961_v57  ;;  %v3056_v56 = vld [vmem:[#allocation7 + $0x184] ss:$16 sps:$4 sm:$0xff]   ;;  %v3059_v57 = vld [vmem:[#allocation7 + $0x18c] ss:$16 sps:$4 sm:$0xff]  }
  0xbe   :  { %949 = vmatprep.subr.bf16.mxu0 %v2966_v58  ;;  %1031 = vmatprep.subr.bf16.mxu1 %v2969_v59  ;;  %v3054_v58 = vld [vmem:[#allocation7 + $0x180] ss:$16 sps:$4 sm:$0xff]   ;;  %v3057_v59 = vld [vmem:[#allocation7 + $0x188] ss:$16 sps:$4 sm:$0xff]  }
  0xc1   :  { %950 = vmatpush1.bf16.msra.mxu0 %v2964_v60  ;;  %1032 = vmatpush1.bf16.msra.mxu1 %v2967_v61  ;;  %v3062_v60 = vld [vmem:[#allocation7 + $0x1a4] ss:$16 sps:$4 sm:$0xff]   ;;  %v3065_v61 = vld [vmem:[#allocation7 + $0x1ac] ss:$16 sps:$4 sm:$0xff]  }
  0xc2   :  { %951 = vmatprep.subr.bf16.mxu0 %v2972_v62  ;;  %1033 = vmatprep.subr.bf16.mxu1 %v2975_v63  ;;  %v3060_v62 = vld [vmem:[#allocation7 + $0x1a0] ss:$16 sps:$4 sm:$0xff]   ;;  %v3063_v63 = vld [vmem:[#allocation7 + $0x1a8] ss:$16 sps:$4 sm:$0xff]  }
  0xc5   :  { %952 = vmatpush1.bf16.msra.mxu0 %v2970_v0  ;;  %1034 = vmatpush1.bf16.msra.mxu1 %v2973_v1  ;;  %v3068_v0 = vld [vmem:[#allocation7 + $0x1c4] ss:$16 sps:$4 sm:$0xff]   ;;  %v3071_v1 = vld [vmem:[#allocation7 + $0x1cc] ss:$16 sps:$4 sm:$0xff]  }
  0xc6   :  { %953 = vmatprep.subr.bf16.mxu0 %v2978_v2  ;;  %1035 = vmatprep.subr.bf16.mxu1 %v2981_v3  ;;  %v3066_v2 = vld [vmem:[#allocation7 + $0x1c0] ss:$16 sps:$4 sm:$0xff]   ;;  %v3069_v3 = vld [vmem:[#allocation7 + $0x1c8] ss:$16 sps:$4 sm:$0xff]  }
  0xc9   :  { %954 = vmatpush1.bf16.msra.mxu0 %v2976_v4  ;;  %1036 = vmatpush1.bf16.msra.mxu1 %v2979_v5  ;;  %v3074_v4 = vld [vmem:[#allocation7 + $0x1e4] ss:$16 sps:$4 sm:$0xff]   ;;  %v3077_v5 = vld [vmem:[#allocation7 + $0x1ec] ss:$16 sps:$4 sm:$0xff]  }
  0xca   :  { %1844 = vmatprep.subr.bf16.mxu0 %v2984_v7  ;;  %1926 = vmatprep.subr.bf16.mxu1 %v2987_v8  ;;  %v3075_v7 = vld [vmem:[#allocation7 + $0x1e8] ss:$16 sps:$4 sm:$0xff]   ;;  %v3080_v8 = vld [vmem:[#allocation7 + $0x204] ss:$16 sps:$4 sm:$0xff]  }
  0xcc   :  { %956 = vmatmul.mubr.bf16.vlgmr.msra.gmra.mrb[0].mxu0 %v90_v11  ;;  %1038 = vmatmul.mubr.bf16.vlgmr.msra.gmra.mrb[0].mxu1 %v90_v11 }
  0xcd   :  { %1845 = vmatpush1.bf16.msra.mxu0 %v2982_v9  ;;  %1927 = vmatpush1.bf16.msra.mxu1 %v2985_v10  ;;  %v3083_v9 = vld [vmem:[#allocation7 + $0x20c] ss:$16 sps:$4 sm:$0xff]   ;;  %v222_v10 = vlaneseq }
  0xce   :  { %1846 = vmatprep.subr.bf16.mxu0 %v2990_v12  ;;  %1928 = vmatprep.subr.bf16.mxu1 %v2993_v13  ;;  %v3483_v13 = vld [vmem:[%s3543_s2] sm:$0xf] }
  0xcf   :  { %v3477_v11 = vshrl.u32 %v222_v10, 7  ;;  %v3140_v10 = vld [vmem:[#allocation7 + $0x344] ss:$16 sps:$4 sm:$0xff]  }
  0xd1   :  { %1847 = vmatpush1.bf16.msra.mxu0 %v2988_v14  ;;  %1929 = vmatpush1.bf16.msra.mxu1 %v2991_v15  ;;  %v224_v12 = vsub.s32 0, %v3477_v11  ;;  %v228_v14 = vsub.s32 1, %v3477_v11  ;;  %v236_v15 = vsub.s32 3, %v3477_v11 }
  0xd2   :  { %1848 = vmatprep.subr.bf16.mxu0 %v2996_v16  ;;  %1930 = vmatprep.subr.bf16.mxu1 %v2999_v17 }
  0xd3   :  { %v225_v16 = vrot.slane %v3483_v13, %v224_v12  ;;  %v229_v17 = vrot.slane %v3483_v13, %v228_v14 }
  0xd5   :  { %1849 = vmatpush1.bf16.msra.mxu0 %v2994_v18  ;;  %1931 = vmatpush1.bf16.msra.mxu1 %v2997_v19  ;;  %v237_v18 = vrot.slane %v3483_v13, %v236_v15 }
  0xd6   :  { %1850 = vmatprep.subr.bf16.mxu0 %v3002_v20  ;;  %1932 = vmatprep.subr.bf16.mxu1 %v3005_v21 }
  0xd9   :  { %1851 = vmatpush1.bf16.msra.mxu0 %v3000_v22  ;;  %1933 = vmatpush1.bf16.msra.mxu1 %v3003_v23 }
  0xda   :  { %1852 = vmatprep.subr.bf16.mxu0 %v3008_v24  ;;  %1934 = vmatprep.subr.bf16.mxu1 %v3011_v25 }
  0xdd   :  { %1853 = vmatpush1.bf16.msra.mxu0 %v3006_v26  ;;  %1935 = vmatpush1.bf16.msra.mxu1 %v3009_v27 }
  0xde   :  { %1854 = vmatprep.subr.bf16.mxu0 %v3014_v28  ;;  %1936 = vmatprep.subr.bf16.mxu1 %v3017_v29 }
  0xe1   :  { %1855 = vmatpush1.bf16.msra.mxu0 %v3012_v30  ;;  %1937 = vmatpush1.bf16.msra.mxu1 %v3015_v31 }
  0xe2   :  { %1856 = vmatprep.subr.bf16.mxu0 %v3020_v32  ;;  %1938 = vmatprep.subr.bf16.mxu1 %v3023_v33 }
  0xe5   :  { %1857 = vmatpush1.bf16.msra.mxu0 %v3018_v34  ;;  %1939 = vmatpush1.bf16.msra.mxu1 %v3021_v35  ;;  %v3078_v34 = vld [vmem:[#allocation7 + $0x200] ss:$16 sps:$4 sm:$0xff]   ;;  %v3081_v35 = vld [vmem:[#allocation7 + $0x208] ss:$16 sps:$4 sm:$0xff]  }
  0xe6   :  { %1858 = vmatprep.subr.bf16.mxu0 %v3026_v36  ;;  %1940 = vmatprep.subr.bf16.mxu1 %v3029_v37  ;;  %v3086_v37 = vld [vmem:[#allocation7 + $0x224] ss:$16 sps:$4 sm:$0xff]  }
  0xe9   :  { %1859 = vmatpush1.bf16.msra.mxu0 %v3024_v38  ;;  %1941 = vmatpush1.bf16.msra.mxu1 %v3027_v39  ;;  %v3089_v38 = vld [vmem:[#allocation7 + $0x22c] ss:$16 sps:$4 sm:$0xff]  }
  0xea   :  { %1860 = vmatprep.subr.bf16.mxu0 %v3032_v40  ;;  %1942 = vmatprep.subr.bf16.mxu1 %v3035_v41  ;;  %v3084_v40 = vld [vmem:[#allocation7 + $0x220] ss:$16 sps:$4 sm:$0xff]   ;;  %v3087_v41 = vld [vmem:[#allocation7 + $0x228] ss:$16 sps:$4 sm:$0xff]  }
  0xed   :  { %1861 = vmatpush1.bf16.msra.mxu0 %v3030_v42  ;;  %1943 = vmatpush1.bf16.msra.mxu1 %v3033_v43  ;;  %v3092_v42 = vld [vmem:[#allocation7 + $0x244] ss:$16 sps:$4 sm:$0xff]   ;;  %v3095_v43 = vld [vmem:[#allocation7 + $0x24c] ss:$16 sps:$4 sm:$0xff]  }
  0xee   :  { %1862 = vmatprep.subr.bf16.mxu0 %v3038_v44  ;;  %1944 = vmatprep.subr.bf16.mxu1 %v3041_v45  ;;  %v3090_v44 = vld [vmem:[#allocation7 + $0x240] ss:$16 sps:$4 sm:$0xff]   ;;  %v3093_v45 = vld [vmem:[#allocation7 + $0x248] ss:$16 sps:$4 sm:$0xff]  }
  0xf1   :  { %1863 = vmatpush1.bf16.msra.mxu0 %v3036_v46  ;;  %1945 = vmatpush1.bf16.msra.mxu1 %v3039_v47  ;;  %v3098_v46 = vld [vmem:[#allocation7 + $0x264] ss:$16 sps:$4 sm:$0xff]   ;;  %v3101_v47 = vld [vmem:[#allocation7 + $0x26c] ss:$16 sps:$4 sm:$0xff]  }
  0xf2   :  { %1864 = vmatprep.subr.bf16.mxu0 %v3044_v48  ;;  %1946 = vmatprep.subr.bf16.mxu1 %v3047_v49  ;;  %v3096_v48 = vld [vmem:[#allocation7 + $0x260] ss:$16 sps:$4 sm:$0xff]   ;;  %v3099_v49 = vld [vmem:[#allocation7 + $0x268] ss:$16 sps:$4 sm:$0xff]  }
  0xf5   :  { %1865 = vmatpush1.bf16.msra.mxu0 %v3042_v50  ;;  %1947 = vmatpush1.bf16.msra.mxu1 %v3045_v51  ;;  %v3104_v50 = vld [vmem:[#allocation7 + $0x284] ss:$16 sps:$4 sm:$0xff]   ;;  %v3107_v51 = vld [vmem:[#allocation7 + $0x28c] ss:$16 sps:$4 sm:$0xff]  }
  0xf6   :  { %1866 = vmatprep.subr.bf16.mxu0 %v3050_v52  ;;  %1948 = vmatprep.subr.bf16.mxu1 %v3053_v53  ;;  %v3102_v52 = vld [vmem:[#allocation7 + $0x280] ss:$16 sps:$4 sm:$0xff]   ;;  %v3105_v53 = vld [vmem:[#allocation7 + $0x288] ss:$16 sps:$4 sm:$0xff]  }
  0xf9   :  { %1867 = vmatpush1.bf16.msra.mxu0 %v3048_v54  ;;  %1949 = vmatpush1.bf16.msra.mxu1 %v3051_v55  ;;  %v3110_v54 = vld [vmem:[#allocation7 + $0x2a4] ss:$16 sps:$4 sm:$0xff]   ;;  %v3113_v55 = vld [vmem:[#allocation7 + $0x2ac] ss:$16 sps:$4 sm:$0xff]  }
  0xfa   :  { %1868 = vmatprep.subr.bf16.mxu0 %v3056_v56  ;;  %1950 = vmatprep.subr.bf16.mxu1 %v3059_v57  ;;  %v3108_v56 = vld [vmem:[#allocation7 + $0x2a0] ss:$16 sps:$4 sm:$0xff]   ;;  %v3111_v57 = vld [vmem:[#allocation7 + $0x2a8] ss:$16 sps:$4 sm:$0xff]  }
  0xfd   :  { %1869 = vmatpush1.bf16.msra.mxu0 %v3054_v58  ;;  %1951 = vmatpush1.bf16.msra.mxu1 %v3057_v59  ;;  %v3116_v58 = vld [vmem:[#allocation7 + $0x2c4] ss:$16 sps:$4 sm:$0xff]   ;;  %v3119_v59 = vld [vmem:[#allocation7 + $0x2cc] ss:$16 sps:$4 sm:$0xff]  }
  0xfe   :  { %1870 = vmatprep.subr.bf16.mxu0 %v3062_v60  ;;  %1952 = vmatprep.subr.bf16.mxu1 %v3065_v61  ;;  %v3114_v60 = vld [vmem:[#allocation7 + $0x2c0] ss:$16 sps:$4 sm:$0xff]   ;;  %v3117_v61 = vld [vmem:[#allocation7 + $0x2c8] ss:$16 sps:$4 sm:$0xff]  }
 0x101   :  { %1871 = vmatpush1.bf16.msra.mxu0 %v3060_v62  ;;  %1953 = vmatpush1.bf16.msra.mxu1 %v3063_v63  ;;  %v3122_v62 = vld [vmem:[#allocation7 + $0x2e4] ss:$16 sps:$4 sm:$0xff]   ;;  %v3125_v63 = vld [vmem:[#allocation7 + $0x2ec] ss:$16 sps:$4 sm:$0xff]  }
 0x102   :  { %1872 = vmatprep.subr.bf16.mxu0 %v3068_v0  ;;  %1954 = vmatprep.subr.bf16.mxu1 %v3071_v1  ;;  %v3120_v0 = vld [vmem:[#allocation7 + $0x2e0] ss:$16 sps:$4 sm:$0xff]   ;;  %v3123_v1 = vld [vmem:[#allocation7 + $0x2e8] ss:$16 sps:$4 sm:$0xff]  }
 0x105   :  { %1873 = vmatpush1.bf16.msra.mxu0 %v3066_v2  ;;  %1955 = vmatpush1.bf16.msra.mxu1 %v3069_v3  ;;  %v3128_v2 = vld [vmem:[#allocation7 + $0x304] ss:$16 sps:$4 sm:$0xff]   ;;  %v3131_v3 = vld [vmem:[#allocation7 + $0x30c] ss:$16 sps:$4 sm:$0xff]  }
 0x106   :  { %1874 = vmatprep.subr.bf16.mxu0 %v3074_v4  ;;  %1956 = vmatprep.subr.bf16.mxu1 %v3077_v5  ;;  %v3126_v4 = vld [vmem:[#allocation7 + $0x300] ss:$16 sps:$4 sm:$0xff]   ;;  %v3129_v5 = vld [vmem:[#allocation7 + $0x308] ss:$16 sps:$4 sm:$0xff]  }
 0x109   :  { %1875 = vmatpush1.bf16.msra.mxu0 %v3072_v6  ;;  %1957 = vmatpush1.bf16.msra.mxu1 %v3075_v7  ;;  %v3134_v6 = vld [vmem:[#allocation7 + $0x324] ss:$16 sps:$4 sm:$0xff]   ;;  %v3137_v7 = vld [vmem:[#allocation7 + $0x32c] ss:$16 sps:$4 sm:$0xff]  }
 0x10a   :  { %1885 = vmatprep.subr.bf16.mxu0 %v3080_v8  ;;  %1967 = vmatprep.subr.bf16.mxu1 %v3083_v9  ;;  %v3132_v8 = vld [vmem:[#allocation7 + $0x320] ss:$16 sps:$4 sm:$0xff]   ;;  %v3135_v9 = vld [vmem:[#allocation7 + $0x328] ss:$16 sps:$4 sm:$0xff]  }
 0x19f   :  { %v957_v19 = vpop.f32.mrb[0].mxu0  ;;  %v3496_v20 = vpop.f32.mrb[0].mxu1 }
 0x1a0   :  { %v2756_v21 = vadd.f32 %v957_v19, %v225_v16  ;;  %v959_v22 = vpop.f32.mrb[1].mxu0  ;;  %v1041_v23 = vpop.f32.mrb[1].mxu1  ;;  %v3143_v16 = vld [vmem:[#allocation7 + $0x34c] ss:$16 sps:$4 sm:$0xff]   ;;  %v3146_v19 = vld [vmem:[#allocation7 + $0x364] ss:$16 sps:$4 sm:$0xff]  }
 0x1a1   :  { %v2757_v24 = vadd.f32 %v959_v22, %v229_v17  ;;  %v2759_v25 = vadd.f32 %v1041_v23, %v237_v18  ;;  %v961_v26 = vpop.f32.mrb[2].mxu0  ;;  %v1043_v27 = vpop.f32.mrb[2].mxu1  ;;  %v3138_v17 = vld [vmem:[#allocation7 + $0x340] ss:$16 sps:$4 sm:$0xff]   ;;  %v3141_v18 = vld [vmem:[#allocation7 + $0x348] ss:$16 sps:$4 sm:$0xff]  }
 0x1a2   :  { %v1046_v28 = vmax.f32 %v2756_v21, 0.0  ;;  %v962_v29 = vpop.f32.mrb[3].mxu0  ;;  %v1044_v30 = vpop.f32.mrb[3].mxu1  ;;  %v3149_v21 = vld [vmem:[#allocation7 + $0x36c] ss:$16 sps:$4 sm:$0xff]  }
 0x1a3   :  { %v1047_v31 = vmax.f32 %v2757_v24, 0.0  ;;  %v1049_v32 = vmax.f32 %v2759_v25, 0.0  ;;  %v3144_v22 = vld [vmem:[#allocation7 + $0x360] ss:$16 sps:$4 sm:$0xff]   ;;  %v3147_v23 = vld [vmem:[#allocation7 + $0x368] ss:$16 sps:$4 sm:$0xff]  }
 0x1a4   :  { %v1050_v36 = vpack.c.bf16 %v1046_v28, %v1046_v28  ;;  %v3152_v24 = vld [vmem:[#allocation7 + $0x384] ss:$16 sps:$4 sm:$0xff]   ;;  %v3155_v25 = vld [vmem:[#allocation7 + $0x38c] ss:$16 sps:$4 sm:$0xff]   ;;  %v3150_v26 = vld [vmem:[#allocation7 + $0x380] ss:$16 sps:$4 sm:$0xff]  }
 0x1a5   :  { %v1051_v33 = vpack.c.bf16 %v1047_v31, %v1047_v31  ;;  %v1053_v39 = vpack.c.bf16 %v1049_v32, %v1049_v32  ;;  %v3153_v27 = vld [vmem:[#allocation7 + $0x388] ss:$16 sps:$4 sm:$0xff]   ;;  %v232_v28 = vsub.s32 2, %v3477_v11  ;;  %v3158_v29 = vld [vmem:[#allocation7 + $0x3a4] ss:$16 sps:$4 sm:$0xff]  }
 0x1a6   :  { %v3161_v30 = vld [vmem:[#allocation7 + $0x3ac] ss:$16 sps:$4 sm:$0xff]   ;;  %v3156_v31 = vld [vmem:[#allocation7 + $0x3a0] ss:$16 sps:$4 sm:$0xff]   ;;  %v3159_v32 = vld [vmem:[#allocation7 + $0x3a8] ss:$16 sps:$4 sm:$0xff]  }
 0x1a7   :  { %1876 = vmatprep.mubr.bf16.mxu0 %v1051_v33  ;;  %1958 = vmatprep.mubr.bf16.mxu1 %v1051_v33  ;;  %v233_v33 = vrot.slane %v3483_v13, %v232_v28 }
 0x1a8   :  { %1877 = vmatmul.mubr.bf16.vlgmr.msra.gmra.mrb[4].mxu0 %v1050_v36  ;;  %1959 = vmatmul.mubr.bf16.vlgmr.msra.gmra.mrb[4].mxu1 %v1050_v36  ;;  %v3162_v36 = vld [vmem:[#allocation7 + $0x3c0] ss:$16 sps:$4 sm:$0xff]  }
 0x1a9   :  { %1886 = vmatpush1.bf16.msra.mxu0 %v3078_v34  ;;  %1968 = vmatpush1.bf16.msra.mxu1 %v3081_v35  ;;  %v3164_v34 = vld [vmem:[#allocation7 + $0x3c4] ss:$16 sps:$4 sm:$0xff]   ;;  %v3167_v35 = vld [vmem:[#allocation7 + $0x3cc] ss:$16 sps:$4 sm:$0xff]  }
 0x1aa   :  { %1917 = vmatprep.mubr.bf16.mxu0 %v1053_v39  ;;  %1999 = vmatprep.mubr.bf16.mxu1 %v1053_v39  ;;  %v3170_v39 = vld [vmem:[#allocation7 + $0x3e4] ss:$16 sps:$4 sm:$0xff]  }
 0x1ab   :  { %1887 = vmatprep.subr.bf16.mxu0 %v3086_v37  ;;  %1969 = vmatprep.subr.bf16.mxu1 %v3089_v38  ;;  %v3165_v37 = vld [vmem:[#allocation7 + $0x3c8] ss:$16 sps:$4 sm:$0xff]   ;;  %v2758_v38 = vadd.f32 %v3496_v20, %v233_v33  ;;  %v3177_v20 = vld [vmem:[#allocation8 + $0x80] sm:$0xff]  }
 0x1ad   :  { %1888 = vmatpush1.bf16.msra.mxu0 %v3084_v40  ;;  %1970 = vmatpush1.bf16.msra.mxu1 %v3087_v41  ;;  %v3173_v40 = vld [vmem:[#allocation7 + $0x3ec] ss:$16 sps:$4 sm:$0xff]   ;;  %v3168_v41 = vld [vmem:[#allocation7 + $0x3e0] ss:$16 sps:$4 sm:$0xff]  }
 0x1ae   :  { %1889 = vmatprep.subr.bf16.mxu0 %v3092_v42  ;;  %1971 = vmatprep.subr.bf16.mxu1 %v3095_v43  ;;  %v3171_v42 = vld [vmem:[#allocation7 + $0x3e8] ss:$16 sps:$4 sm:$0xff]   ;;  %v1048_v43 = vmax.f32 %v2758_v38, 0.0 }
 0x1b0   :  { %v1052_v13 = vpack.c.bf16 %v1048_v43, %v1048_v43 }
 0x1b1   :  { %1890 = vmatpush1.bf16.msra.mxu0 %v3090_v44  ;;  %1972 = vmatpush1.bf16.msra.mxu1 %v3093_v45  ;;  %v3174_v44 = vld [vmem:[#allocation8 + $0x40] sm:$0xff]  }
 0x1b2   :  { %1891 = vmatprep.subr.bf16.mxu0 %v3098_v46  ;;  %1973 = vmatprep.subr.bf16.mxu1 %v3101_v47  ;;  %v3175_v45 = vld [vmem:[#allocation8 + $0xc0] sm:$0xff]   ;;  %v3178_v47 = vld [vmem:[#allocation8 + $0x48] sm:$0xff]  }
 0x1b3   :  { %v3176_v46 = vld [vmem:[#allocation8] sm:$0xff]  }
 0x1b5   :  { %1892 = vmatpush1.bf16.msra.mxu0 %v3096_v48  ;;  %1974 = vmatpush1.bf16.msra.mxu1 %v3099_v49  ;;  %v3179_v48 = vld [vmem:[#allocation8 + $0xc8] sm:$0xff]  }
 0x1b6   :  { %1893 = vmatprep.subr.bf16.mxu0 %v3104_v50  ;;  %1975 = vmatprep.subr.bf16.mxu1 %v3107_v51  ;;  %v3180_v49 = vld [vmem:[#allocation8 + $0x8] sm:$0xff]   ;;  %v3182_v51 = vld [vmem:[#allocation8 + $0x50] sm:$0xff]  }
 0x1b7   :  { %v3181_v50 = vld [vmem:[#allocation8 + $0x88] sm:$0xff]  }
 0x1b9   :  { %1894 = vmatpush1.bf16.msra.mxu0 %v3102_v52  ;;  %1976 = vmatpush1.bf16.msra.mxu1 %v3105_v53  ;;  %v3183_v52 = vld [vmem:[#allocation8 + $0xd0] sm:$0xff]  }
 0x1ba   :  { %1895 = vmatprep.subr.bf16.mxu0 %v3110_v54  ;;  %1977 = vmatprep.subr.bf16.mxu1 %v3113_v55  ;;  %v3184_v53 = vld [vmem:[#allocation8 + $0x10] sm:$0xff]   ;;  %v3186_v55 = vld [vmem:[#allocation8 + $0x58] sm:$0xff]  }
 0x1bb   :  { %v3185_v54 = vld [vmem:[#allocation8 + $0x90] sm:$0xff]  }
 0x1bd   :  { %1896 = vmatpush1.bf16.msra.mxu0 %v3108_v56  ;;  %1978 = vmatpush1.bf16.msra.mxu1 %v3111_v57  ;;  %v3187_v56 = vld [vmem:[#allocation8 + $0xd8] sm:$0xff]  }
 0x1be   :  { %1897 = vmatprep.subr.bf16.mxu0 %v3116_v58  ;;  %1979 = vmatprep.subr.bf16.mxu1 %v3119_v59  ;;  %v3188_v57 = vld [vmem:[#allocation8 + $0x18] sm:$0xff]   ;;  %v3190_v59 = vld [vmem:[#allocation8 + $0x60] sm:$0xff]  }
 0x1bf   :  { %v3189_v58 = vld [vmem:[#allocation8 + $0x98] sm:$0xff]  }
 0x1c1   :  { %1898 = vmatpush1.bf16.msra.mxu0 %v3114_v60  ;;  %1980 = vmatpush1.bf16.msra.mxu1 %v3117_v61  ;;  %v3191_v60 = vld [vmem:[#allocation8 + $0xe0] sm:$0xff]  }
 0x1c2   :  { %1899 = vmatprep.subr.bf16.mxu0 %v3122_v62  ;;  %1981 = vmatprep.subr.bf16.mxu1 %v3125_v63  ;;  %v3192_v61 = vld [vmem:[#allocation8 + $0x20] sm:$0xff]   ;;  %v3194_v63 = vld [vmem:[#allocation8 + $0x68] sm:$0xff]  }
 0x1c3   :  { %v3193_v62 = vld [vmem:[#allocation8 + $0xa0] sm:$0xff]  }
 0x1c5   :  { %1900 = vmatpush1.bf16.msra.mxu0 %v3120_v0  ;;  %1982 = vmatpush1.bf16.msra.mxu1 %v3123_v1  ;;  %v3195_v0 = vld [vmem:[#allocation8 + $0xe8] sm:$0xff]  }
 0x1c6   :  { %1901 = vmatprep.subr.bf16.mxu0 %v3128_v2  ;;  %1983 = vmatprep.subr.bf16.mxu1 %v3131_v3  ;;  %v3196_v1 = vld [vmem:[#allocation8 + $0x28] sm:$0xff]   ;;  %v3198_v3 = vld [vmem:[#allocation8 + $0x70] sm:$0xff]  }
 0x1c7   :  { %v3197_v2 = vld [vmem:[#allocation8 + $0xa8] sm:$0xff]  }
 0x1c9   :  { %1902 = vmatpush1.bf16.msra.mxu0 %v3126_v4  ;;  %1984 = vmatpush1.bf16.msra.mxu1 %v3129_v5  ;;  %v3199_v4 = vld [vmem:[#allocation8 + $0xf0] sm:$0xff]  }
 0x1ca   :  { %1903 = vmatprep.subr.bf16.mxu0 %v3134_v6  ;;  %1985 = vmatprep.subr.bf16.mxu1 %v3137_v7  ;;  %v3200_v5 = vld [vmem:[#allocation8 + $0x30] sm:$0xff]   ;;  %v3202_v7 = vld [vmem:[#allocation8 + $0x78] sm:$0xff]  }
 0x1cb   :  { %v3201_v6 = vld [vmem:[#allocation8 + $0xb0] sm:$0xff]  }
 0x1cd   :  { %1904 = vmatpush1.bf16.msra.mxu0 %v3132_v8  ;;  %1986 = vmatpush1.bf16.msra.mxu1 %v3135_v9  ;;  %v3203_v8 = vld [vmem:[#allocation8 + $0xf8] sm:$0xff]  }
 0x1ce   :  { %1905 = vmatprep.subr.bf16.mxu0 %v3140_v10  ;;  %1987 = vmatprep.subr.bf16.mxu1 %v3143_v16  ;;  %v3204_v9 = vld [vmem:[#allocation8 + $0x38] sm:$0xff]   ;;  %v1182_v16 = vld [vmem:[%s3545_s4] sm:$0xf]  ;;  %s3376_s4 = smov [#allocation11]  }
 0x1cf   :  { %v3205_v10 = vld [vmem:[#allocation8 + $0xb8] sm:$0xff]   ;;  %s2404_s11 = sshll.u32 %s3376_s4, 4  ;;  %s2405_s11 = int_to_ptr.vmem [resolvable:$true] %s2404_s11 }
 0x1d0   :  { %s3314_s12 = scalar_lea.vmem %s2405_s11, 512  ;;  %p3319_p5 = scmp.lt.s32.totalorder %s2405_s11, %s2405_s11 }
 0x1d1   :  { %1906 = vmatpush1.bf16.msra.mxu0 %v3138_v17  ;;  %1988 = vmatpush1.bf16.msra.mxu1 %v3141_v18  ;;  %v1187_v17 = vrot.slane %v1182_v16, %v224_v12  ;;  %v1195_v18 = vrot.slane %v1182_v16, %v232_v28  ;;  %p3315_p4 = scmp.ne.s32.totalorder %s2405_s11, %s3314_s12  ;;  %p3320_p6 = scmp.lt.s32.totalorder %s3314_s12, %s3314_s12 }
 0x1d2   :  { %1907 = vmatprep.subr.bf16.mxu0 %v3146_v19  ;;  %1989 = vmatprep.subr.bf16.mxu1 %v3149_v21  ;;  %v1191_v19 = vrot.slane %v1182_v16, %v228_v14  ;;  %v1199_v21 = vrot.slane %v1182_v16, %v236_v15 }
 0x1d3   :  { %p3321_p7 = por %p3320_p6, %p3319_p5 }
 0x1d5   :  { %1908 = vmatpush1.bf16.msra.mxu0 %v3144_v22  ;;  %1990 = vmatpush1.bf16.msra.mxu1 %v3147_v23  ;;  %p3322_p8 = pnand %p3321_p7, %p3315_p4 }
 0x1d6   :  { %1909 = vmatprep.subr.bf16.mxu0 %v3152_v24  ;;  %1991 = vmatprep.subr.bf16.mxu1 %v3155_v25 }
 0x1d9   :  { %1910 = vmatpush1.bf16.msra.mxu0 %v3150_v26  ;;  %1992 = vmatpush1.bf16.msra.mxu1 %v3153_v27 }
 0x1da   :  { %1911 = vmatprep.subr.bf16.mxu0 %v3158_v29  ;;  %1993 = vmatprep.subr.bf16.mxu1 %v3161_v30 }
 0x1dd   :  { %1912 = vmatpush1.bf16.msra.mxu0 %v3156_v31  ;;  %1994 = vmatpush1.bf16.msra.mxu1 %v3159_v32 }
 0x1de   :  { %1913 = vmatprep.subr.bf16.mxu0 %v3164_v34  ;;  %1995 = vmatprep.subr.bf16.mxu1 %v3167_v35 }
 0x1e1   :  { %1914 = vmatpush1.bf16.msra.mxu0 %v3162_v36  ;;  %1996 = vmatpush1.bf16.msra.mxu1 %v3165_v37 }
 0x1e2   :  { %1915 = vmatprep.subr.bf16.mxu0 %v3170_v39  ;;  %1997 = vmatprep.subr.bf16.mxu1 %v3173_v40 }
 0x1e5   :  { %1916 = vmatpush1.bf16.msra.mxu0 %v3168_v41  ;;  %1998 = vmatpush1.bf16.msra.mxu1 %v3171_v42 }
 0x1e6   :  { %2712 = vmatprep.subr.bf16.mxu0 %v3174_v44  ;;  %2734 = vmatprep.subr.bf16.mxu1 %v3175_v45 }
 0x1e8   :  { %1918 = vmatmul.mubr.bf16.vlgmr.msra.gmra.mrb[4].mxu0 %v1052_v13  ;;  %2000 = vmatmul.mubr.bf16.vlgmr.msra.gmra.mrb[4].mxu1 %v1052_v13  ;;  %v3222_v13 = vld [vmem:[#allocation2] sm:$0xff] }
 0x1e9   :  { %2713 = vmatpush3.bf16.msra.mxu0 %v3176_v46  ;;  %2735 = vmatpush3.bf16.msra.mxu1 %v3177_v20  ;;  %v3223_v46 = vld [vmem:[#allocation2 + $0x10] sm:$0xff] }
 0x1ea   :  { %2714 = vmatprep.subr.bf16.mxu0 %v3178_v47  ;;  %2736 = vmatprep.subr.bf16.mxu1 %v3179_v48  ;;  %v3224_v48 = vld [vmem:[#allocation2 + $0x8] sm:$0xff] }
 0x1ed   :  { %2715 = vmatpush3.bf16.msra.mxu0 %v3180_v49  ;;  %2737 = vmatpush3.bf16.msra.mxu1 %v3181_v50  ;;  %v3225_v50 = vld [vmem:[#allocation2 + $0x18] sm:$0xff] }
 0x1ee   :  { %2716 = vmatprep.subr.bf16.mxu0 %v3182_v51  ;;  %2738 = vmatprep.subr.bf16.mxu1 %v3183_v52 }
 0x1f1   :  { %2717 = vmatpush3.bf16.msra.mxu0 %v3184_v53  ;;  %2739 = vmatpush3.bf16.msra.mxu1 %v3185_v54 }
 0x1f2   :  { %2718 = vmatprep.subr.bf16.mxu0 %v3186_v55  ;;  %2740 = vmatprep.subr.bf16.mxu1 %v3187_v56 }
 0x1f5   :  { %2719 = vmatpush3.bf16.msra.mxu0 %v3188_v57  ;;  %2741 = vmatpush3.bf16.msra.mxu1 %v3189_v58 }
 0x1f6   :  { %2720 = vmatprep.subr.bf16.mxu0 %v3190_v59  ;;  %2742 = vmatprep.subr.bf16.mxu1 %v3191_v60 }
 0x1f9   :  { %2721 = vmatpush3.bf16.msra.mxu0 %v3192_v61  ;;  %2743 = vmatpush3.bf16.msra.mxu1 %v3193_v62 }
 0x1fa   :  { %2722 = vmatprep.subr.bf16.mxu0 %v3194_v63  ;;  %2744 = vmatprep.subr.bf16.mxu1 %v3195_v0 }
 0x1fd   :  { %2723 = vmatpush3.bf16.msra.mxu0 %v3196_v1  ;;  %2745 = vmatpush3.bf16.msra.mxu1 %v3197_v2 }
 0x1fe   :  { %2724 = vmatprep.subr.bf16.mxu0 %v3198_v3  ;;  %2746 = vmatprep.subr.bf16.mxu1 %v3199_v4 }
 0x201   :  { %2725 = vmatpush3.bf16.msra.mxu0 %v3200_v5  ;;  %2747 = vmatpush3.bf16.msra.mxu1 %v3201_v6 }
 0x202   :  { %2726 = vmatprep.subr.bf16.mxu0 %v3202_v7  ;;  %2748 = vmatprep.subr.bf16.mxu1 %v3203_v8 }
 0x205   :  { %2727 = vmatpush3.bf16.msra.mxu0 %v3204_v9  ;;  %2749 = vmatpush3.bf16.msra.mxu1 %v3205_v10 }
 0x2bb   :  { %v1919_v22 = vpop.f32.mrb[4].mxu0  ;;  %v2001_v23 = vpop.f32.mrb[4].mxu1 }
 0x2bc   :  { %v2760_v24 = vadd.f32 %v1919_v22, %v1187_v17  ;;  %v2762_v25 = vadd.f32 %v2001_v23, %v1195_v18  ;;  %v1921_v26 = vpop.f32.mrb[5].mxu0  ;;  %v2003_v27 = vpop.f32.mrb[5].mxu1 }
 0x2bd   :  { %v2761_v29 = vadd.f32 %v1921_v26, %v1191_v19  ;;  %v2763_v30 = vadd.f32 %v2003_v27, %v1199_v21  ;;  %v1923_v31 = vpop.f32.mrb[6].mxu0  ;;  %v2005_v32 = vpop.f32.mrb[6].mxu1 }
 0x2be   :  { %v2675_v12 = vmul.f32 -1.442695, %v2760_v24  ;;  %v2677_v33 = vmul.f32 -1.442695, %v2762_v25  ;;  %v1924_v34 = vpop.f32.mrb[7].mxu0  ;;  %v2006_v28 = vpop.f32.mrb[7].mxu1 }
 0x2bf   :  { %v2676_v35 = vmul.f32 -1.442695, %v2761_v29  ;;  %v2678_v36 = vmul.f32 -1.442695, %v2763_v30 }
 0x2c0   :  { %3206 = vpow2.f32 %v2675_v12 }
 0x2c1   :  { %3208 = vpow2.f32 %v2677_v33 }
 0x2c2   :  { %3210 = vpow2.f32 %v2676_v35 }
 0x2c3   :  { %3212 = vpow2.f32 %v2678_v36 }
 0x2ca   :  { %v3207_v11 = vpop.eup %3206 }
 0x2cb   :  { %v3209_v14 = vpop.eup %3208  ;;  %v2020_v15 = vadd.f32 1.0, %v3207_v11 }
 0x2cc   :  { %v3211_v37 = vpop.eup %3210  ;;  %v2022_v38 = vadd.f32 1.0, %v3209_v14 }
 0x2cd   :  { %v3213_v39 = vpop.eup %3212  ;;  %3214 = vrcp.f32 %v2020_v15  ;;  %v2021_v40 = vadd.f32 1.0, %v3211_v37 }
 0x2ce   :  { %3216 = vrcp.f32 %v2022_v38  ;;  %v2023_v41 = vadd.f32 1.0, %v3213_v39 }
 0x2cf   :  { %3218 = vrcp.f32 %v2021_v40 }
 0x2d0   :  { %3220 = vrcp.f32 %v2023_v41 }
 0x2d7   :  { %v3215_v42 = vpop.eup %3214 }
 0x2d8   :  { %v3217_v43 = vpop.eup %3216  ;;  %v2032_v44 = vmul.f32 %v3222_v13, %v3215_v42 }
 0x2d9   :  { %v3219_v45 = vpop.eup %3218  ;;  %v2034_v20 = vmul.f32 %v3223_v46, %v3217_v43 }
 0x2da   :  { %v3221_v47 = vpop.eup %3220  ;;  %v2033_v49 = vmul.f32 %v3224_v48, %v3219_v45  ;;  %2036 = vst [vmem:[#allocation11] sm:$0xff] %v2032_v44  ;;  %v2040_v54 = vpack.c.bf16 %v2032_v44, %v2032_v44 }
 0x2db   :  { %v2035_v51 = vmul.f32 %v3225_v50, %v3221_v47  ;;  %2038 = vst [vmem:[#allocation11 + $0x10] sm:$0xff] %v2034_v20  ;;  %v2042_v55 = vpack.c.bf16 %v2034_v20, %v2034_v20 }
 0x2dc   :  { %2037 = vst [vmem:[#allocation11 + $0x8] sm:$0xff] %v2033_v49  ;;  %v2041_v52 = vpack.c.bf16 %v2033_v49, %v2033_v49 }
 0x2dd   :  { %2039 = vst [vmem:[#allocation11 + $0x18] sm:$0xff] %v2035_v51  ;;  %v2043_v53 = vpack.c.bf16 %v2035_v51, %v2035_v51 }
 0x2de   :  { %2339 = vmatprep.mubr.bf16.mxu0 %v2041_v52 }
 0x2df   :  { %2379 = vmatprep.mubr.bf16.mxu1 %v2043_v53  ;;  %2340 = vmatmul.mubr.bf16.vlgmr.msra.gmra.mrb[8].mxu0 %v2040_v54 }
 0x2e0   :  { %2380 = vmatmul.mubr.bf16.vlgmr.msra.gmra.mrb[8].mxu1 %v2042_v55 }
 0x2e1   :  { %3325 = shalt.err (!%p3322_p8)
}
 0x2e2   :  { %s3326_s17 = scalar_lea.hbm %s3549_s8, 512 }
 0x2e3   :  { %p3327_p9 = scmp.ne.s32.totalorder %s3549_s8, %s3326_s17  ;;  %p3330_p10 = scmp.lt.u32.totalorder %s3326_s17, %s3549_s8 }
 0x2e5   :  { %p3332_p11 = pnand %p3330_p10, %p3327_p9 }
 0x2e7   :  { %3335 = shalt.err (!%p3332_p11)
}
 0x2e8   :  { %2407 = dma.vmem_to_hbm [thread:$0]  %s2405_s11, 512, %s3549_s8, [#allocation12]   ;;  %v2679_v58 = vld [vmem:[%s3547_s6] ss:$0 sm:$0xff] }
 0x2e9   :  { %s3377_s26 = smov [#allocation10]  }
 0x2ea   :  { %s2394_s27 = sshll.u32 %s3377_s26, 4  ;;  %s2395_s27 = int_to_ptr.vmem [resolvable:$true] %s2394_s27 }
 0x2eb   :  { %s3336_s8 = scalar_lea.vmem %s2395_s27, 128  ;;  %p3341_p13 = scmp.lt.s32.totalorder %s2395_s27, %s2395_s27 }
 0x2ec   :  { %p3337_p12 = scmp.ne.s32.totalorder %s2395_s27, %s3336_s8  ;;  %p3342_p0 = scmp.lt.s32.totalorder %s3336_s8, %s3336_s8 }
 0x2ee   :  { %p3343_p1 = por %p3342_p0, %p3341_p13 }
 0x2f0   :  { %p3344_p2 = pnand %p3343_p1, %p3337_p12 }
 0x3b2   :  { %v2728_v56 = vpop.f32.mrb[8].mxu0 }
 0x3b3   :  { %v2750_v57 = vpop.f32.mrb[8].mxu1  ;;  %v2729_v59 = vpop.f32.mrb[9].mxu0 }
 0x3b4   :  { %v2730_v60 = vadd.f32 %v2729_v59, %v2728_v56  ;;  %v2751_v61 = vpop.f32.mrb[9].mxu1  ;;  %v2731_v62 = vpop.f32.mrb[10].mxu0 }
 0x3b5   :  { %v2752_v63 = vadd.f32 %v2751_v61, %v2750_v57  ;;  %v2753_v0 = vpop.f32.mrb[10].mxu1  ;;  %v2732_v1 = vpop.f32.mrb[11].mxu0 }
 0x3b6   :  { %v2342_v2 = vadd.f32 %v2730_v60, %v2679_v58  ;;  %v2754_v3 = vpop.f32.mrb[11].mxu1 }
 0x3b8   :  { %v2382_v4 = vadd.f32 %v2752_v63, %v2342_v2 }
 0x3ba   :  { %2387 = vst [vmem:[#allocation10] sm:$0xff] %v2382_v4 }
 0x3bb   :  { %3347 = shalt.err (!%p3344_p2)
}
 0x3bc   :  { %s3348_s30 = scalar_lea.hbm %s3548_s7, 128 }
 0x3bd   :  { %p3349_p3 = scmp.ne.s32.totalorder %s3548_s7, %s3348_s30  ;;  %p3352_p4 = scmp.lt.u32.totalorder %s3348_s30, %s3548_s7 }
 0x3bf   :  { %p3354_p5 = pnand %p3352_p4, %p3349_p3 }
 0x3c1   :  { %3357 = shalt.err (!%p3354_p5)
}
 0x3c2   :  { %2397 = dma.vmem_to_hbm [thread:$0]  %s2395_s27, 128, %s3548_s7, [#allocation4]  }
 0x3c3   :  { %3364 = dma.done.wait [#allocation4], 128  }
 0x3c4   :  { %3365 = vsyncadd [#allocation4], 4294967168 }
 0x3c5   :  { %3366 = dma.done.wait [#allocation12], 512  }
 0x3c6   :  { %3367 = vsyncadd [#allocation12], 4294966784 }
 0x3c7   :  { %2414 = vsyncpa [#allocation3], 1 }
 0x3c8   :  { %2415 = vsyncpa [#allocation6], 1 }
 0x3c9   :  { %2416 = vsyncpa [#allocation9], 1 }
 0x3ca   :  { %2417 = vsyncpa [#allocation4], 1 }
 0x3cb   :  { %2418 = vsyncpa [#allocation12], 1 }

</bundles_post_ra>
